<compile_context>
chip_gen: v6e
topology: v6e:2x2x1
jax: 0.10.0
libtpu: 0.0.40
codegen_flags: <defaults>
</compile_context>

<pallas_src>
import functools

import jax
import jax.numpy as jnp
from jax.experimental import pallas as pl
from jax.experimental.pallas import tpu as pltpu

_LANE = 128
_SUBLANE = 8


def _round_up(x, m):
    return ((x + m - 1) // m) * m


def _mlp_kernel(x_ref, w1_ref, b1_ref, w2_ref, b2_ref, w3_ref, b3_ref, o_ref):
    x = x_ref[...]
    # fc1 + ReLU (f32 accumulation on the MXU, bias add / ReLU in f32 on the VPU)
    h = jnp.dot(x, w1_ref[...], preferred_element_type=jnp.float32) + b1_ref[...]
    h = jnp.maximum(h, 0.0)
    # fc2 + ReLU
    h = jnp.dot(h.astype(w2_ref.dtype), w2_ref[...],
                preferred_element_type=jnp.float32) + b2_ref[...]
    h = jnp.maximum(h, 0.0)
    # fc3 (no activation)
    out = jnp.dot(h.astype(w3_ref.dtype), w3_ref[...],
                  preferred_element_type=jnp.float32) + b3_ref[...]
    o_ref[...] = out.astype(o_ref.dtype)


@functools.partial(jax.jit, static_argnames=("batch_tile", "compute_dtype"))
def mlp_forward(x, w1, b1, w2, b2, w3, b3, *, batch_tile=256,
                compute_dtype=jnp.float32):
    """y = relu(relu(x @ w1 + b1) @ w2 + b2) @ w3 + b3.

    compute_dtype: jnp.float32 (v5e) or jnp.bfloat16 (v6e/v7x fast path).
    Accumulation is always f32; output dtype matches x.
    """
    B, in_dim = x.shape
    hidden = w1.shape[1]
    out_dim = w3.shape[1]
    out_dtype = x.dtype
    assert batch_tile % _SUBLANE == 0

    # Pad feature dims to lane width (128) and batch to a tile multiple so every
    # load/store is unmasked and lane-dense; padding is zeros so results are exact.
    in_p = _round_up(in_dim, _LANE)
    out_p = _round_up(out_dim, _LANE)
    B_p = _round_up(B, batch_tile)

    x_p = jnp.pad(x, ((0, B_p - B), (0, in_p - in_dim))).astype(compute_dtype)
    w1_p = jnp.pad(w1, ((0, in_p - in_dim), (0, 0))).astype(compute_dtype)
    w2_c = w2.astype(compute_dtype)
    w3_p = jnp.pad(w3, ((0, 0), (0, out_p - out_dim))).astype(compute_dtype)
    b1_c = b1.astype(jnp.float32)
    b2_c = b2.astype(jnp.float32)
    b3_p = jnp.pad(b3, ((0, 0), (0, out_p - out_dim))).astype(jnp.float32)

    grid = (B_p // batch_tile,)

    itemsize = jnp.dtype(compute_dtype).itemsize
    flops = 2 * B_p * (in_p * hidden + hidden * hidden + hidden * out_p)
    bytes_accessed = (
        B_p * in_p * itemsize
        + (in_p * hidden + hidden * hidden + hidden * out_p) * itemsize
        + (2 * hidden + out_p) * 4
        + B_p * out_p * jnp.dtype(out_dtype).itemsize
    )

    out_padded = pl.pallas_call(
        _mlp_kernel,
        out_shape=jax.ShapeDtypeStruct((B_p, out_p), out_dtype),
        grid_spec=pltpu.PrefetchScalarGridSpec(
            num_scalar_prefetch=0,
            grid=grid,
            in_specs=[
                # x: tiled over the batch grid axis
                pl.BlockSpec((batch_tile, in_p), lambda i: (i, 0)),
                # weights / biases: constant block -> DMA'd once, resident in VMEM
                pl.BlockSpec((in_p, hidden), lambda i: (0, 0)),
                pl.BlockSpec((1, hidden), lambda i: (0, 0)),
                pl.BlockSpec((hidden, hidden), lambda i: (0, 0)),
                pl.BlockSpec((1, hidden), lambda i: (0, 0)),
                pl.BlockSpec((hidden, out_p), lambda i: (0, 0)),
                pl.BlockSpec((1, out_p), lambda i: (0, 0)),
            ],
            out_specs=pl.BlockSpec((batch_tile, out_p), lambda i: (i, 0)),
        ),
        compiler_params=pltpu.CompilerParams(
            dimension_semantics=("parallel",),  # batch tiles shard across TCs (v7x)
        ),
        cost_estimate=pl.CostEstimate(
            flops=int(flops),
            transcendentals=0,
            bytes_accessed=int(bytes_accessed),
        ),
    )(x_p, w1_p, b1_c, w2_c, b2_c, w3_p, b3_p)

    # Slice away batch/feature padding.
    return out_padded[:B, :out_dim]


def init_linear_params(key, in_features, out_features, dtype=jnp.float32):
    """Deterministic init mimicking torch.nn.Linear: U(-1/sqrt(in), 1/sqrt(in))."""
    kw, kb = jax.random.split(key)
    bound = 1.0 / jnp.sqrt(jnp.asarray(in_features, dtype))
    # stored as (in, out) so forward is x @ W + b
    w = jax.random.uniform(kw, (in_features, out_features), dtype, -bound, bound)
    b = jax.random.uniform(kb, (1, out_features), dtype, -bound, bound)
    return w, b


def ref_forward(x, w1, b1, w2, b2, w3, b3, compute_dtype=jnp.float32):
    """Pure-JAX reference with the same dtype policy as the kernel."""
    cd = compute_dtype
    h = jnp.dot(x.astype(cd), w1.astype(cd),
                preferred_element_type=jnp.float32) + b1
    h = jnp.maximum(h, 0.0)
    h = jnp.dot(h.astype(cd), w2.astype(cd),
                preferred_element_type=jnp.float32) + b2
    h = jnp.maximum(h, 0.0)
    return jnp.dot(h.astype(cd), w3.astype(cd),
                   preferred_element_type=jnp.float32) + b3


if __name__ == "__main__":
    key = jax.random.PRNGKey(0)
    k_x, k1, k2, k3 = jax.random.split(key, 4)

    input_size = 16     # e.g. mujoco observation dim
    hidden = 256
    output_size = 8     # e.g. action dim

    w1, b1 = init_linear_params(k1, input_size, hidden)
    w2, b2 = init_linear_params(k2, hidden, hidden)
    w3, b3 = init_linear_params(k3, hidden, output_size)

    # --- small deployment-style batch, f32 compute -------------------------
    x_small = jax.random.normal(k_x, (8, input_size), jnp.float32)
    out = mlp_forward(x_small, w1, b1, w2, b2, w3, b3,
                      batch_tile=256, compute_dtype=jnp.float32)
    out = jax.block_until_ready(out)
    ref = ref_forward(x_small, w1, b1, w2, b2, w3, b3)
    assert out.shape == (8, output_size)
    assert jnp.allclose(out, ref, atol=1e-4, rtol=1e-4)

    # --- non-tile-multiple batch, multi-step grid (both v7x TCs active) ----
    x_big = jax.random.normal(k_x, (200, input_size), jnp.float32)
    out_big = mlp_forward(x_big, w1, b1, w2, b2, w3, b3,
                          batch_tile=128, compute_dtype=jnp.float32)
    out_big = jax.block_until_ready(out_big)
    ref_big = ref_forward(x_big, w1, b1, w2, b2, w3, b3)
    assert out_big.shape == (200, output_size)
    assert jnp.allclose(out_big, ref_big, atol=1e-4, rtol=1e-4)

    # --- bf16 weights/activations, f32 accumulation (v6e/v7x fast path) ----
    out_bf16 = mlp_forward(x_big, w1, b1, w2, b2, w3, b3,
                           batch_tile=128, compute_dtype=jnp.bfloat16)
    out_bf16 = jax.block_until_ready(out_bf16)
    ref_bf16 = ref_forward(x_big, w1, b1, w2, b2, w3, b3,
                           compute_dtype=jnp.bfloat16)
    assert out_bf16.shape == (200, output_size)
    assert jnp.allclose(out_bf16, ref_bf16, atol=2e-2, rtol=2e-2)

    print("KERNEL_OK")
</pallas_src>

<mosaic_0001>
module attributes {stable_mosaic.version = 11 : i64} {
  func.func @_mlp_kernel(%arg0: i32, %arg1: memref<256x128xf32, #tpu.memory_space<vmem>>, %arg2: memref<128x256xf32, #tpu.memory_space<vmem>>, %arg3: memref<1x256xf32, #tpu.memory_space<vmem>>, %arg4: memref<256x256xf32, #tpu.memory_space<vmem>>, %arg5: memref<1x256xf32, #tpu.memory_space<vmem>>, %arg6: memref<256x128xf32, #tpu.memory_space<vmem>>, %arg7: memref<1x128xf32, #tpu.memory_space<vmem>>, %arg8: memref<256x128xf32, #tpu.memory_space<vmem>>) attributes {dimension_semantics = [#tpu.dimension_semantics<parallel>], iteration_bounds = array<i64: 1>, scalar_prefetch = 0 : i64, scratch_operands = 0 : i64, tpu.core_type = #tpu.core_type<tc>, window_params = [{transform_indices = @transform_0, window_bounds = array<i64: 256, 128>}, {pipeline_mode = #tpu.pipeline_mode<synchronous>, transform_indices = @transform_1, window_bounds = array<i64: 128, 256>}, {pipeline_mode = #tpu.pipeline_mode<synchronous>, transform_indices = @transform_2, window_bounds = array<i64: 1, 256>}, {pipeline_mode = #tpu.pipeline_mode<synchronous>, transform_indices = @transform_3, window_bounds = array<i64: 256, 256>}, {pipeline_mode = #tpu.pipeline_mode<synchronous>, transform_indices = @transform_4, window_bounds = array<i64: 1, 256>}, {pipeline_mode = #tpu.pipeline_mode<synchronous>, transform_indices = @transform_5, window_bounds = array<i64: 256, 128>}, {pipeline_mode = #tpu.pipeline_mode<synchronous>, transform_indices = @transform_6, window_bounds = array<i64: 1, 128>}, {transform_indices = @transform_7, window_bounds = array<i64: 256, 128>}]} {
    %c0 = arith.constant 0 : index
    %c0_0 = arith.constant 0 : index
    %0 = vector.load %arg1[%c0, %c0_0] : memref<256x128xf32, #tpu.memory_space<vmem>>, vector<256x128xf32>
    %c0_1 = arith.constant 0 : index
    %c0_2 = arith.constant 0 : index
    %1 = vector.load %arg2[%c0_1, %c0_2] : memref<128x256xf32, #tpu.memory_space<vmem>>, vector<128x256xf32>
    %cst = arith.constant dense<0.000000e+00> : vector<256x256xf32>
    %2 = tpu.matmul %0, %1, %cst {dimension_numbers = #tpu.dot_dimension_numbers<[1], [0], [0], [1], [0, 0, 1, 1], [], []>} : vector<256x128xf32>, vector<128x256xf32>, vector<256x256xf32> -> vector<256x256xf32>
    %c0_3 = arith.constant 0 : index
    %c0_4 = arith.constant 0 : index
    %3 = vector.load %arg3[%c0_3, %c0_4] : memref<1x256xf32, #tpu.memory_space<vmem>>, vector<1x256xf32>
    %4 = vector.broadcast %3 : vector<1x256xf32> to vector<256x256xf32>
    %5 = arith.addf %2, %4 : vector<256x256xf32>
    %cst_5 = arith.constant 0.000000e+00 : f32
    %6 = vector.broadcast %cst_5 : f32 to vector<256x256xf32>
    %7 = arith.maximumf %5, %6 : vector<256x256xf32>
    %c0_6 = arith.constant 0 : index
    %c0_7 = arith.constant 0 : index
    %8 = vector.load %arg4[%c0_6, %c0_7] : memref<256x256xf32, #tpu.memory_space<vmem>>, vector<256x256xf32>
    %cst_8 = arith.constant dense<0.000000e+00> : vector<256x256xf32>
    %9 = tpu.matmul %7, %8, %cst_8 {dimension_numbers = #tpu.dot_dimension_numbers<[1], [0], [0], [1], [0, 0, 1, 1], [], []>} : vector<256x256xf32>, vector<256x256xf32>, vector<256x256xf32> -> vector<256x256xf32>
    %c0_9 = arith.constant 0 : index
    %c0_10 = arith.constant 0 : index
    %10 = vector.load %arg5[%c0_9, %c0_10] : memref<1x256xf32, #tpu.memory_space<vmem>>, vector<1x256xf32>
    %11 = vector.broadcast %10 : vector<1x256xf32> to vector<256x256xf32>
    %12 = arith.addf %9, %11 : vector<256x256xf32>
    %cst_11 = arith.constant 0.000000e+00 : f32
    %13 = vector.broadcast %cst_11 : f32 to vector<256x256xf32>
    %14 = arith.maximumf %12, %13 : vector<256x256xf32>
    %c0_12 = arith.constant 0 : index
    %c0_13 = arith.constant 0 : index
    %15 = vector.load %arg6[%c0_12, %c0_13] : memref<256x128xf32, #tpu.memory_space<vmem>>, vector<256x128xf32>
    %cst_14 = arith.constant dense<0.000000e+00> : vector<256x128xf32>
    %16 = tpu.matmul %14, %15, %cst_14 {dimension_numbers = #tpu.dot_dimension_numbers<[1], [0], [0], [1], [0, 0, 1, 1], [], []>} : vector<256x256xf32>, vector<256x128xf32>, vector<256x128xf32> -> vector<256x128xf32>
    %c0_15 = arith.constant 0 : index
    %c0_16 = arith.constant 0 : index
    %17 = vector.load %arg7[%c0_15, %c0_16] : memref<1x128xf32, #tpu.memory_space<vmem>>, vector<1x128xf32>
    %18 = vector.broadcast %17 : vector<1x128xf32> to vector<256x128xf32>
    %19 = arith.addf %16, %18 : vector<256x128xf32>
    %c0_17 = arith.constant 0 : index
    %c0_18 = arith.constant 0 : index
    %20 = vector.load %arg8[%c0_17, %c0_18] : memref<256x128xf32, #tpu.memory_space<vmem>>, vector<256x128xf32>
    tpu.vector_store %arg8[%c0_17, %c0_18], %19 {strides = array<i32>} : memref<256x128xf32, #tpu.memory_space<vmem>>, vector<256x128xf32>,
    return
  }
  func.func @transform_0(%arg0: i32) -> (i32, i32) {
    %c0_i32 = arith.constant 0 : i32
    %c0_i32_0 = arith.constant 0 : i32
    return %arg0, %c0_i32 : i32, i32
  }
  func.func @transform_1(%arg0: i32) -> (i32, i32) {
    %c0_i32 = arith.constant 0 : i32
    %c0_i32_0 = arith.constant 0 : i32
    %c0_i32_1 = arith.constant 0 : i32
    return %c0_i32, %c0_i32_0 : i32, i32
  }
  func.func @transform_2(%arg0: i32) -> (i32, i32) {
    %c0_i32 = arith.constant 0 : i32
    %c0_i32_0 = arith.constant 0 : i32
    %c0_i32_1 = arith.constant 0 : i32
    return %c0_i32, %c0_i32_0 : i32, i32
  }
  func.func @transform_3(%arg0: i32) -> (i32, i32) {
    %c0_i32 = arith.constant 0 : i32
    %c0_i32_0 = arith.constant 0 : i32
    %c0_i32_1 = arith.constant 0 : i32
    return %c0_i32, %c0_i32_0 : i32, i32
  }
  func.func @transform_4(%arg0: i32) -> (i32, i32) {
    %c0_i32 = arith.constant 0 : i32
    %c0_i32_0 = arith.constant 0 : i32
    %c0_i32_1 = arith.constant 0 : i32
    return %c0_i32, %c0_i32_0 : i32, i32
  }
  func.func @transform_5(%arg0: i32) -> (i32, i32) {
    %c0_i32 = arith.constant 0 : i32
    %c0_i32_0 = arith.constant 0 : i32
    %c0_i32_1 = arith.constant 0 : i32
    return %c0_i32, %c0_i32_0 : i32, i32
  }
  func.func @transform_6(%arg0: i32) -> (i32, i32) {
    %c0_i32 = arith.constant 0 : i32
    %c0_i32_0 = arith.constant 0 : i32
    %c0_i32_1 = arith.constant 0 : i32
    return %c0_i32, %c0_i32_0 : i32, i32
  }
  func.func @transform_7(%arg0: i32) -> (i32, i32) {
    %c0_i32 = arith.constant 0 : i32
    %c0_i32_0 = arith.constant 0 : i32
    return %arg0, %c0_i32 : i32, i32
  }
}

</mosaic_0001>

<bundles_post_ra>
// kernel: mlp_forward.1
= control target key start
LH: loop header
LB: loop body
LE: loop exit
PB: predicated region body
PF: predicated region fallthrough
CT: control target
= control target key end

     0   :  { %v1154_v3 = vmov 0.0   ;;  %s2086_s1 = inlined_call_operand.vmem [shape: f32[128,256], index: 1, kind: input, shape index: {}]   ;;  %s2087_s0 = inlined_call_operand.vmem [shape: f32[256,128], index: 0, kind: input, shape index: {}]   ;;  %s2088_s3 = inlined_call_operand.vmem [shape: f32[256,256], index: 3, kind: input, shape index: {}]   ;;  %s2089_s2 = inlined_call_operand.vmem [shape: f32[1,256], index: 2, kind: input, shape index: {}]   ;;  %s2090_s5 = inlined_call_operand.vmem [shape: f32[256,128], index: 5, kind: input, shape index: {}]   ;;  %s2091_s4 = inlined_call_operand.vmem [shape: f32[1,256], index: 4, kind: input, shape index: {}]   ;;  %s2092_s6 = inlined_call_operand.vmem [shape: f32[1,128], index: 6, kind: input, shape index: {}]   ;;  %s2093_s7 = inlined_call_operand.vmem [shape: f32[256,128], index: 7, kind: output, shape index: {}]  }
   0x1   :  { %v89_v0 = vld [vmem:[%s2086_s1 + $0xf8] sm:$0xff]  ;;  %v88_v1 = vld [vmem:[%s2086_s1 + $0xf0] sm:$0xff]  ;;  %v87_v2 = vld [vmem:[%s2086_s1 + $0xe8] sm:$0xff]  ;;  %166 = vmatprep.mubr.f32.mxu0 %v1154_v3  ;;  %262 = vmatprep.mubr.f32.mxu1 %v1154_v3 }
   0x2   :  { %102 = vmatprep.subr.mxu0 %v89_v0  ;;  %v86_v4 = vld [vmem:[%s2086_s1 + $0xe0] sm:$0xff]  ;;  %1121 = vmatprep.subr.mxu1 %v89_v0  ;;  %v85_v5 = vld [vmem:[%s2086_s1 + $0xd8] sm:$0xff]  ;;  %v84_v6 = vld [vmem:[%s2086_s1 + $0xd0] sm:$0xff] }
   0x3   :  { %103 = vmatpush1.msra.mxu0 %v88_v1  ;;  %1137 = vmatpush1.msra.mxu1 %v88_v1  ;;  %v83_v7 = vld [vmem:[%s2086_s1 + $0xc8] sm:$0xff]  ;;  %v82_v8 = vld [vmem:[%s2086_s1 + $0xc0] sm:$0xff]  ;;  %v81_v9 = vld [vmem:[%s2086_s1 + $0xb8] sm:$0xff] }
   0x4   :  { %104 = vmatprep.subr.mxu0 %v87_v2  ;;  %1122 = vmatprep.subr.mxu1 %v87_v2  ;;  %v80_v10 = vld [vmem:[%s2086_s1 + $0xb0] sm:$0xff]  ;;  %v79_v11 = vld [vmem:[%s2086_s1 + $0xa8] sm:$0xff]  ;;  %v78_v12 = vld [vmem:[%s2086_s1 + $0xa0] sm:$0xff] }
   0x5   :  { %105 = vmatpush1.msra.mxu0 %v86_v4  ;;  %1138 = vmatpush1.msra.mxu1 %v86_v4  ;;  %v77_v13 = vld [vmem:[%s2086_s1 + $0x98] sm:$0xff]  ;;  %v76_v14 = vld [vmem:[%s2086_s1 + $0x90] sm:$0xff]  ;;  %v75_v15 = vld [vmem:[%s2086_s1 + $0x88] sm:$0xff] }
   0x6   :  { %106 = vmatprep.subr.mxu0 %v85_v5  ;;  %1123 = vmatprep.subr.mxu1 %v85_v5  ;;  %v74_v16 = vld [vmem:[%s2086_s1 + $0x80] sm:$0xff]  ;;  %v73_v17 = vld [vmem:[%s2086_s1 + $0x78] sm:$0xff]  ;;  %v72_v18 = vld [vmem:[%s2086_s1 + $0x70] sm:$0xff] }
   0x7   :  { %107 = vmatpush1.msra.mxu0 %v84_v6  ;;  %1139 = vmatpush1.msra.mxu1 %v84_v6  ;;  %v71_v19 = vld [vmem:[%s2086_s1 + $0x68] sm:$0xff]  ;;  %v70_v20 = vld [vmem:[%s2086_s1 + $0x60] sm:$0xff]  ;;  %v69_v21 = vld [vmem:[%s2086_s1 + $0x58] sm:$0xff] }
   0x8   :  { %108 = vmatprep.subr.mxu0 %v83_v7  ;;  %1124 = vmatprep.subr.mxu1 %v83_v7  ;;  %v68_v22 = vld [vmem:[%s2086_s1 + $0x50] sm:$0xff]  ;;  %v67_v23 = vld [vmem:[%s2086_s1 + $0x48] sm:$0xff]  ;;  %v66_v24 = vld [vmem:[%s2086_s1 + $0x40] sm:$0xff] }
   0x9   :  { %109 = vmatpush1.msra.mxu0 %v82_v8  ;;  %1140 = vmatpush1.msra.mxu1 %v82_v8  ;;  %v65_v25 = vld [vmem:[%s2086_s1 + $0x38] sm:$0xff]  ;;  %v64_v26 = vld [vmem:[%s2086_s1 + $0x30] sm:$0xff]  ;;  %v63_v27 = vld [vmem:[%s2086_s1 + $0x28] sm:$0xff] }
   0xa   :  { %110 = vmatprep.subr.mxu0 %v81_v9  ;;  %1125 = vmatprep.subr.mxu1 %v81_v9  ;;  %v62_v28 = vld [vmem:[%s2086_s1 + $0x20] sm:$0xff]  ;;  %v61_v29 = vld [vmem:[%s2086_s1 + $0x18] sm:$0xff]  ;;  %v60_v30 = vld [vmem:[%s2086_s1 + $0x10] sm:$0xff] }
   0xb   :  { %111 = vmatpush1.msra.mxu0 %v80_v10  ;;  %1141 = vmatpush1.msra.mxu1 %v80_v10  ;;  %v59_v31 = vld [vmem:[%s2086_s1 + $0x8] sm:$0xff]  ;;  %v58_v32 = vld [vmem:[%s2086_s1] sm:$0xff]  ;;  %v454_v35 = vld [vmem:[%s2088_s3 + $0xf8] sm:$0xff] }
   0xc   :  { %112 = vmatprep.subr.mxu0 %v79_v11  ;;  %1126 = vmatprep.subr.mxu1 %v79_v11  ;;  %v26_v33 = vld [vmem:[%s2087_s0] sm:$0xff]  ;;  %v453_v36 = vld [vmem:[%s2088_s3 + $0xf0] sm:$0xff]  ;;  %v27_v37 = vld [vmem:[%s2087_s0 + $0x8] sm:$0xff] }
   0xd   :  { %113 = vmatpush1.msra.mxu0 %v78_v12  ;;  %1142 = vmatpush1.msra.mxu1 %v78_v12  ;;  %v42_v34 = vld [vmem:[%s2087_s0 + $0x80] sm:$0xff]  ;;  %v43_v38 = vld [vmem:[%s2087_s0 + $0x88] sm:$0xff]  ;;  %v28_v41 = vld [vmem:[%s2087_s0 + $0x10] sm:$0xff] }
   0xe   :  { %114 = vmatprep.subr.mxu0 %v77_v13  ;;  %1127 = vmatprep.subr.mxu1 %v77_v13  ;;  %v452_v39 = vld [vmem:[%s2088_s3 + $0xe8] sm:$0xff]  ;;  %v451_v40 = vld [vmem:[%s2088_s3 + $0xe0] sm:$0xff]  ;;  %v44_v42 = vld [vmem:[%s2087_s0 + $0x90] sm:$0xff] }
   0xf   :  { %115 = vmatpush1.msra.mxu0 %v76_v14  ;;  %1143 = vmatpush1.msra.mxu1 %v76_v14  ;;  %v450_v43 = vld [vmem:[%s2088_s3 + $0xd8] sm:$0xff]  ;;  %v449_v44 = vld [vmem:[%s2088_s3 + $0xd0] sm:$0xff]  ;;  %v448_v47 = vld [vmem:[%s2088_s3 + $0xc8] sm:$0xff] }
  0x10   :  { %116 = vmatprep.subr.mxu0 %v75_v15  ;;  %1128 = vmatprep.subr.mxu1 %v75_v15  ;;  %v29_v45 = vld [vmem:[%s2087_s0 + $0x18] sm:$0xff]  ;;  %v447_v48 = vld [vmem:[%s2088_s3 + $0xc0] sm:$0xff]  ;;  %v445_v52 = vld [vmem:[%s2088_s3 + $0xb0] sm:$0xff] }
  0x11   :  { %117 = vmatpush1.msra.mxu0 %v74_v16  ;;  %1144 = vmatpush1.msra.mxu1 %v74_v16  ;;  %v45_v46 = vld [vmem:[%s2087_s0 + $0x98] sm:$0xff]  ;;  %v30_v49 = vld [vmem:[%s2087_s0 + $0x20] sm:$0xff]  ;;  %v31_v53 = vld [vmem:[%s2087_s0 + $0x28] sm:$0xff] }
  0x12   :  { %118 = vmatprep.subr.mxu0 %v73_v17  ;;  %1129 = vmatprep.subr.mxu1 %v73_v17  ;;  %v46_v50 = vld [vmem:[%s2087_s0 + $0xa0] sm:$0xff]  ;;  %v446_v51 = vld [vmem:[%s2088_s3 + $0xb8] sm:$0xff]  ;;  %v47_v54 = vld [vmem:[%s2087_s0 + $0xa8] sm:$0xff] }
  0x13   :  { %119 = vmatpush1.msra.mxu0 %v72_v18  ;;  %1145 = vmatpush1.msra.mxu1 %v72_v18  ;;  %v444_v55 = vld [vmem:[%s2088_s3 + $0xa8] sm:$0xff]  ;;  %v443_v56 = vld [vmem:[%s2088_s3 + $0xa0] sm:$0xff]  ;;  %v32_v57 = vld [vmem:[%s2087_s0 + $0x30] sm:$0xff] }
  0x14   :  { %120 = vmatprep.subr.mxu0 %v71_v19  ;;  %1130 = vmatprep.subr.mxu1 %v71_v19  ;;  %v48_v58 = vld [vmem:[%s2087_s0 + $0xb0] sm:$0xff]  ;;  %v442_v59 = vld [vmem:[%s2088_s3 + $0x98] sm:$0xff]  ;;  %v440_v63 = vld [vmem:[%s2088_s3 + $0x88] sm:$0xff] }
  0x15   :  { %121 = vmatpush1.msra.mxu0 %v70_v20  ;;  %1146 = vmatpush1.msra.mxu1 %v70_v20  ;;  %v441_v60 = vld [vmem:[%s2088_s3 + $0x90] sm:$0xff]  ;;  %v33_v61 = vld [vmem:[%s2087_s0 + $0x38] sm:$0xff]  ;;  %v439_v0 = vld [vmem:[%s2088_s3 + $0x80] sm:$0xff] }
  0x16   :  { %122 = vmatprep.subr.mxu0 %v69_v21  ;;  %1131 = vmatprep.subr.mxu1 %v69_v21  ;;  %v49_v62 = vld [vmem:[%s2087_s0 + $0xb8] sm:$0xff]  ;;  %v34_v1 = vld [vmem:[%s2087_s0 + $0x40] sm:$0xff]  ;;  %v437_v5 = vld [vmem:[%s2088_s3 + $0x70] sm:$0xff] }
  0x17   :  { %123 = vmatpush1.msra.mxu0 %v68_v22  ;;  %1147 = vmatpush1.msra.mxu1 %v68_v22  ;;  %v50_v2 = vld [vmem:[%s2087_s0 + $0xc0] sm:$0xff]  ;;  %v438_v4 = vld [vmem:[%s2088_s3 + $0x78] sm:$0xff]  ;;  %v35_v6 = vld [vmem:[%s2087_s0 + $0x48] sm:$0xff] }
  0x18   :  { %124 = vmatprep.subr.mxu0 %v67_v23  ;;  %1132 = vmatprep.subr.mxu1 %v67_v23  ;;  %v51_v7 = vld [vmem:[%s2087_s0 + $0xc8] sm:$0xff]  ;;  %v435_v9 = vld [vmem:[%s2088_s3 + $0x60] sm:$0xff]  ;;  %v36_v10 = vld [vmem:[%s2087_s0 + $0x50] sm:$0xff] }
  0x19   :  { %125 = vmatpush1.msra.mxu0 %v66_v24  ;;  %1148 = vmatpush1.msra.mxu1 %v66_v24  ;;  %v436_v8 = vld [vmem:[%s2088_s3 + $0x68] sm:$0xff]  ;;  %v52_v11 = vld [vmem:[%s2087_s0 + $0xd0] sm:$0xff]  ;;  %v434_v12 = vld [vmem:[%s2088_s3 + $0x58] sm:$0xff] }
  0x1a   :  { %126 = vmatprep.subr.mxu0 %v65_v25  ;;  %1133 = vmatprep.subr.mxu1 %v65_v25  ;;  %v433_v13 = vld [vmem:[%s2088_s3 + $0x50] sm:$0xff]  ;;  %v37_v14 = vld [vmem:[%s2087_s0 + $0x58] sm:$0xff]  ;;  %v432_v16 = vld [vmem:[%s2088_s3 + $0x48] sm:$0xff] }
  0x1b   :  { %127 = vmatpush1.msra.mxu0 %v64_v26  ;;  %1149 = vmatpush1.msra.mxu1 %v64_v26  ;;  %v53_v15 = vld [vmem:[%s2087_s0 + $0xd8] sm:$0xff]  ;;  %v431_v17 = vld [vmem:[%s2088_s3 + $0x40] sm:$0xff]  ;;  %v429_v21 = vld [vmem:[%s2088_s3 + $0x30] sm:$0xff] }
  0x1c   :  { %128 = vmatprep.subr.mxu0 %v63_v27  ;;  %1134 = vmatprep.subr.mxu1 %v63_v27  ;;  %v38_v18 = vld [vmem:[%s2087_s0 + $0x60] sm:$0xff]  ;;  %v430_v20 = vld [vmem:[%s2088_s3 + $0x38] sm:$0xff]  ;;  %v39_v22 = vld [vmem:[%s2087_s0 + $0x68] sm:$0xff] }
  0x1d   :  { %129 = vmatpush1.msra.mxu0 %v62_v28  ;;  %1150 = vmatpush1.msra.mxu1 %v62_v28  ;;  %v54_v19 = vld [vmem:[%s2087_s0 + $0xe0] sm:$0xff]  ;;  %v55_v23 = vld [vmem:[%s2087_s0 + $0xe8] sm:$0xff]  ;;  %v40_v26 = vld [vmem:[%s2087_s0 + $0x70] sm:$0xff] }
  0x1e   :  { %130 = vmatprep.subr.mxu0 %v61_v29  ;;  %1135 = vmatprep.subr.mxu1 %v61_v29  ;;  %v428_v24 = vld [vmem:[%s2088_s3 + $0x28] sm:$0xff]  ;;  %v427_v25 = vld [vmem:[%s2088_s3 + $0x20] sm:$0xff]  ;;  %v56_v27 = vld [vmem:[%s2087_s0 + $0xf0] sm:$0xff] }
  0x1f   :  { %131 = vmatpush1.msra.mxu0 %v60_v30  ;;  %1151 = vmatpush1.msra.mxu1 %v60_v30  ;;  %v426_v28 = vld [vmem:[%s2088_s3 + $0x18] sm:$0xff]  ;;  %v425_v29 = vld [vmem:[%s2088_s3 + $0x10] sm:$0xff] }
  0x20   :  { %132 = vmatprep.subr.mxu0 %v59_v31  ;;  %1136 = vmatprep.subr.mxu1 %v59_v31  ;;  %v41_v30 = vld [vmem:[%s2087_s0 + $0x78] sm:$0xff] }
  0x21   :  { %133 = vmatpush1.msra.mxu0 %v58_v32  ;;  %1152 = vmatpush1.msra.mxu1 %v58_v32  ;;  %v57_v31 = vld [vmem:[%s2087_s0 + $0xf8] sm:$0xff]  ;;  %v424_v32 = vld [vmem:[%s2088_s3 + $0x8] sm:$0xff] }
  0x22   :  { %167 = vmatmul.mubr.f32.vlgmr.msra.gmra.mxu0 %v26_v33  ;;  %263 = vmatmul.mubr.f32.vlgmr.msra.gmra.mxu1 %v42_v34  ;;  %v423_v33 = vld [vmem:[%s2088_s3] sm:$0xff]  ;;  %v486_v34 = vld [vmem:[%s2088_s3 + $0x1f8] sm:$0xff] }
  0x23   :  { %172 = vmatprep.mubr.f32.mxu0 %v1154_v3  ;;  %268 = vmatprep.mubr.f32.mxu1 %v1154_v3 }
  0x24   :  { %499 = vmatprep.subr.mxu1 %v454_v35  ;;  %859 = vmatprep.subr.mxu0 %v1154_v3  ;;  %v485_v35 = vld [vmem:[%s2088_s3 + $0x1f0] sm:$0xff] }
  0x25   :  { %500 = vmatpush1.msra.mxu1 %v453_v36  ;;  %v484_v36 = vld [vmem:[%s2088_s3 + $0x1e8] sm:$0xff] }
  0x26   :  { %173 = vmatmul.mubr.f32.gmra.mxu0 %v27_v37  ;;  %269 = vmatmul.mubr.f32.gmra.mxu1 %v43_v38  ;;  %v483_v37 = vld [vmem:[%s2088_s3 + $0x1e0] sm:$0xff]  ;;  %v482_v38 = vld [vmem:[%s2088_s3 + $0x1d8] sm:$0xff] }
  0x27   :  { %178 = vmatprep.mubr.f32.mxu0 %v1154_v3  ;;  %274 = vmatprep.mubr.f32.mxu1 %v1154_v3 }
  0x28   :  { %501 = vmatprep.subr.mxu1 %v452_v39  ;;  %v481_v39 = vld [vmem:[%s2088_s3 + $0x1d0] sm:$0xff] }
  0x29   :  { %502 = vmatpush1.msra.mxu1 %v451_v40  ;;  %v480_v40 = vld [vmem:[%s2088_s3 + $0x1c8] sm:$0xff] }
  0x2a   :  { %179 = vmatmul.mubr.f32.gmra.mxu0 %v28_v41  ;;  %275 = vmatmul.mubr.f32.gmra.mxu1 %v44_v42  ;;  %v479_v41 = vld [vmem:[%s2088_s3 + $0x1c0] sm:$0xff]  ;;  %v478_v42 = vld [vmem:[%s2088_s3 + $0x1b8] sm:$0xff] }
  0x2b   :  { %184 = vmatprep.mubr.f32.mxu0 %v1154_v3  ;;  %280 = vmatprep.mubr.f32.mxu1 %v1154_v3 }
  0x2c   :  { %503 = vmatprep.subr.mxu1 %v450_v43  ;;  %v477_v43 = vld [vmem:[%s2088_s3 + $0x1b0] sm:$0xff] }
  0x2d   :  { %504 = vmatpush1.msra.mxu1 %v449_v44  ;;  %v476_v44 = vld [vmem:[%s2088_s3 + $0x1a8] sm:$0xff] }
  0x2e   :  { %185 = vmatmul.mubr.f32.gmra.mxu0 %v29_v45  ;;  %281 = vmatmul.mubr.f32.gmra.mxu1 %v45_v46  ;;  %v475_v45 = vld [vmem:[%s2088_s3 + $0x1a0] sm:$0xff]  ;;  %v474_v46 = vld [vmem:[%s2088_s3 + $0x198] sm:$0xff] }
  0x2f   :  { %190 = vmatprep.mubr.f32.mxu0 %v1154_v3  ;;  %286 = vmatprep.mubr.f32.mxu1 %v1154_v3 }
  0x30   :  { %505 = vmatprep.subr.mxu1 %v448_v47  ;;  %v473_v47 = vld [vmem:[%s2088_s3 + $0x190] sm:$0xff] }
  0x31   :  { %506 = vmatpush1.msra.mxu1 %v447_v48  ;;  %v472_v48 = vld [vmem:[%s2088_s3 + $0x188] sm:$0xff] }
  0x32   :  { %191 = vmatmul.mubr.f32.gmra.mxu0 %v30_v49  ;;  %287 = vmatmul.mubr.f32.gmra.mxu1 %v46_v50  ;;  %v471_v49 = vld [vmem:[%s2088_s3 + $0x180] sm:$0xff]  ;;  %v470_v50 = vld [vmem:[%s2088_s3 + $0x178] sm:$0xff] }
  0x33   :  { %196 = vmatprep.mubr.f32.mxu0 %v1154_v3  ;;  %292 = vmatprep.mubr.f32.mxu1 %v1154_v3 }
  0x34   :  { %507 = vmatprep.subr.mxu1 %v446_v51  ;;  %v469_v51 = vld [vmem:[%s2088_s3 + $0x170] sm:$0xff] }
  0x35   :  { %508 = vmatpush1.msra.mxu1 %v445_v52  ;;  %v468_v52 = vld [vmem:[%s2088_s3 + $0x168] sm:$0xff] }
  0x36   :  { %197 = vmatmul.mubr.f32.gmra.mxu0 %v31_v53  ;;  %293 = vmatmul.mubr.f32.gmra.mxu1 %v47_v54  ;;  %v467_v53 = vld [vmem:[%s2088_s3 + $0x160] sm:$0xff]  ;;  %v466_v54 = vld [vmem:[%s2088_s3 + $0x158] sm:$0xff] }
  0x37   :  { %202 = vmatprep.mubr.f32.mxu0 %v1154_v3  ;;  %298 = vmatprep.mubr.f32.mxu1 %v1154_v3 }
  0x38   :  { %509 = vmatprep.subr.mxu1 %v444_v55  ;;  %v465_v55 = vld [vmem:[%s2088_s3 + $0x150] sm:$0xff] }
  0x39   :  { %510 = vmatpush1.msra.mxu1 %v443_v56  ;;  %v464_v56 = vld [vmem:[%s2088_s3 + $0x148] sm:$0xff] }
  0x3a   :  { %203 = vmatmul.mubr.f32.gmra.mxu0 %v32_v57  ;;  %299 = vmatmul.mubr.f32.gmra.mxu1 %v48_v58  ;;  %v463_v57 = vld [vmem:[%s2088_s3 + $0x140] sm:$0xff]  ;;  %v462_v58 = vld [vmem:[%s2088_s3 + $0x138] sm:$0xff] }
  0x3b   :  { %208 = vmatprep.mubr.f32.mxu0 %v1154_v3  ;;  %304 = vmatprep.mubr.f32.mxu1 %v1154_v3 }
  0x3c   :  { %511 = vmatprep.subr.mxu1 %v442_v59  ;;  %v461_v59 = vld [vmem:[%s2088_s3 + $0x130] sm:$0xff] }
  0x3d   :  { %512 = vmatpush1.msra.mxu1 %v441_v60  ;;  %v460_v60 = vld [vmem:[%s2088_s3 + $0x128] sm:$0xff] }
  0x3e   :  { %209 = vmatmul.mubr.f32.gmra.mxu0 %v33_v61  ;;  %305 = vmatmul.mubr.f32.gmra.mxu1 %v49_v62  ;;  %v459_v61 = vld [vmem:[%s2088_s3 + $0x120] sm:$0xff]  ;;  %v458_v62 = vld [vmem:[%s2088_s3 + $0x118] sm:$0xff] }
  0x3f   :  { %214 = vmatprep.mubr.f32.mxu0 %v1154_v3  ;;  %310 = vmatprep.mubr.f32.mxu1 %v1154_v3 }
  0x40   :  { %513 = vmatprep.subr.mxu1 %v440_v63  ;;  %v457_v63 = vld [vmem:[%s2088_s3 + $0x110] sm:$0xff] }
  0x41   :  { %514 = vmatpush1.msra.mxu1 %v439_v0  ;;  %v456_v0 = vld [vmem:[%s2088_s3 + $0x108] sm:$0xff] }
  0x42   :  { %215 = vmatmul.mubr.f32.gmra.mxu0 %v34_v1  ;;  %311 = vmatmul.mubr.f32.gmra.mxu1 %v50_v2  ;;  %v455_v1 = vld [vmem:[%s2088_s3 + $0x100] sm:$0xff]  ;;  %v92_v2 = vlaneseq }
  0x43   :  { %220 = vmatprep.mubr.f32.mxu0 %v1154_v3  ;;  %316 = vmatprep.mubr.f32.mxu1 %v1154_v3 }
  0x44   :  { %515 = vmatprep.subr.mxu1 %v438_v4  ;;  %v1612_v4 = vshrl.u32 %v92_v2, 7 }
  0x45   :  { %516 = vmatpush1.msra.mxu1 %v437_v5 }
  0x46   :  { %221 = vmatmul.mubr.f32.gmra.mxu0 %v35_v6  ;;  %317 = vmatmul.mubr.f32.gmra.mxu1 %v51_v7  ;;  %v94_v5 = vsub.s32 0, %v1612_v4  ;;  %v90_v6 = vld [vmem:[%s2089_s2] sm:$0x3]  ;;  %v98_v7 = vsub.s32 1, %v1612_v4 }
  0x47   :  { %226 = vmatprep.mubr.f32.mxu0 %v1154_v3  ;;  %322 = vmatprep.mubr.f32.mxu1 %v1154_v3 }
  0x48   :  { %517 = vmatprep.subr.mxu1 %v436_v8  ;;  %v1621_v8 = vrot.slane %v90_v6, %v94_v5 }
  0x49   :  { %518 = vmatpush1.msra.mxu1 %v435_v9  ;;  %v1625_v9 = vrot.slane %v90_v6, %v98_v7 }
  0x4a   :  { %227 = vmatmul.mubr.f32.gmra.mxu0 %v36_v10  ;;  %323 = vmatmul.mubr.f32.gmra.mxu1 %v52_v11 }
  0x4b   :  { %232 = vmatprep.mubr.f32.mxu0 %v1154_v3  ;;  %328 = vmatprep.mubr.f32.mxu1 %v1154_v3 }
  0x4c   :  { %519 = vmatprep.subr.mxu1 %v434_v12 }
  0x4d   :  { %520 = vmatpush1.msra.mxu1 %v433_v13 }
  0x4e   :  { %233 = vmatmul.mubr.f32.gmra.mxu0 %v37_v14  ;;  %329 = vmatmul.mubr.f32.gmra.mxu1 %v53_v15 }
  0x4f   :  { %238 = vmatprep.mubr.f32.mxu0 %v1154_v3  ;;  %334 = vmatprep.mubr.f32.mxu1 %v1154_v3 }
  0x50   :  { %521 = vmatprep.subr.mxu1 %v432_v16 }
  0x51   :  { %522 = vmatpush1.msra.mxu1 %v431_v17 }
  0x52   :  { %239 = vmatmul.mubr.f32.gmra.mxu0 %v38_v18  ;;  %335 = vmatmul.mubr.f32.gmra.mxu1 %v54_v19  ;;  %v835_v19 = vld [vmem:[%s2090_s5 + $0x78] sm:$0xff] }
  0x53   :  { %244 = vmatprep.mubr.f32.mxu0 %v1154_v3  ;;  %340 = vmatprep.mubr.f32.mxu1 %v1154_v3 }
  0x54   :  { %523 = vmatprep.subr.mxu1 %v430_v20  ;;  %v834_v20 = vld [vmem:[%s2090_s5 + $0x70] sm:$0xff]  ;;  %860 = vmatpush1.msra.mxu0 %v835_v19 }
  0x55   :  { %524 = vmatpush1.msra.mxu1 %v429_v21  ;;  %861 = vmatprep.subr.mxu0 %v1154_v3  ;;  %v822_v19 = vld [vmem:[%s2090_s5 + $0x10] sm:$0xff] }
  0x56   :  { %245 = vmatmul.mubr.f32.gmra.mxu0 %v39_v22  ;;  %341 = vmatmul.mubr.f32.gmra.mxu1 %v55_v23 }
  0x57   :  { %250 = vmatprep.mubr.f32.mxu0 %v1154_v3  ;;  %346 = vmatprep.mubr.f32.mxu1 %v1154_v3 }
  0x58   :  { %525 = vmatprep.subr.mxu1 %v428_v24  ;;  %862 = vmatpush1.msra.mxu0 %v834_v20 }
  0x59   :  { %526 = vmatpush1.msra.mxu1 %v427_v25  ;;  %863 = vmatprep.subr.mxu0 %v1154_v3 }
  0x5a   :  { %251 = vmatmul.mubr.f32.gmra.mxu0 %v40_v26  ;;  %347 = vmatmul.mubr.f32.gmra.mxu1 %v56_v27  ;;  %v833_v26 = vld [vmem:[%s2090_s5 + $0x68] sm:$0xff] }
  0x5b   :  { %256 = vmatprep.mubr.f32.mxu0 %v1154_v3  ;;  %352 = vmatprep.mubr.f32.mxu1 %v1154_v3 }
  0x5c   :  { %527 = vmatprep.subr.mxu1 %v426_v28  ;;  %864 = vmatpush1.msra.mxu0 %v833_v26  ;;  %v821_v26 = vld [vmem:[%s2090_s5 + $0x8] sm:$0xff] }
  0x5d   :  { %528 = vmatpush1.msra.mxu1 %v425_v29  ;;  %v832_v29 = vld [vmem:[%s2090_s5 + $0x60] sm:$0xff]  ;;  %865 = vmatprep.subr.mxu0 %v1154_v3 }
  0x5e   :  { %257 = vmatmul.mubr.f32.gmra.mxu0 %v41_v30  ;;  %353 = vmatmul.mubr.f32.gmra.mxu1 %v57_v31 }
  0x5f   :  { %529 = vmatprep.subr.mxu1 %v424_v32  ;;  %866 = vmatpush1.msra.mxu0 %v832_v29  ;;  %v820_v29 = vld [vmem:[%s2090_s5] sm:$0xff] }
  0x60   :  { %530 = vmatpush1.msra.mxu1 %v423_v33  ;;  %867 = vmatprep.subr.mxu0 %v1154_v3 }
  0x61   :  { %531 = vmatprep.subr.mxu1 %v486_v34 }
  0x62   :  { %532 = vmatpush2.msra.mxu1 %v485_v35  ;;  %v831_v35 = vld [vmem:[%s2090_s5 + $0x58] sm:$0xff] }
  0x63   :  { %533 = vmatprep.subr.mxu1 %v484_v36  ;;  %868 = vmatpush1.msra.mxu0 %v831_v35 }
  0x64   :  { %534 = vmatpush2.msra.mxu1 %v483_v37  ;;  %869 = vmatprep.subr.mxu0 %v1154_v3 }
  0x65   :  { %535 = vmatprep.subr.mxu1 %v482_v38  ;;  %v830_v38 = vld [vmem:[%s2090_s5 + $0x50] sm:$0xff] }
  0x66   :  { %536 = vmatpush2.msra.mxu1 %v481_v39  ;;  %870 = vmatpush1.msra.mxu0 %v830_v38 }
  0x67   :  { %537 = vmatprep.subr.mxu1 %v480_v40  ;;  %871 = vmatprep.subr.mxu0 %v1154_v3 }
  0x68   :  { %538 = vmatpush2.msra.mxu1 %v479_v41 }
  0x69   :  { %539 = vmatprep.subr.mxu1 %v478_v42 }
  0x6a   :  { %540 = vmatpush2.msra.mxu1 %v477_v43 }
  0x6b   :  { %541 = vmatprep.subr.mxu1 %v476_v44  ;;  %v829_v44 = vld [vmem:[%s2090_s5 + $0x48] sm:$0xff] }
  0x6c   :  { %542 = vmatpush2.msra.mxu1 %v475_v45  ;;  %872 = vmatpush1.msra.mxu0 %v829_v44 }
  0x6d   :  { %543 = vmatprep.subr.mxu1 %v474_v46  ;;  %873 = vmatprep.subr.mxu0 %v1154_v3 }
  0x6e   :  { %544 = vmatpush2.msra.mxu1 %v473_v47  ;;  %v828_v47 = vld [vmem:[%s2090_s5 + $0x40] sm:$0xff] }
  0x6f   :  { %545 = vmatprep.subr.mxu1 %v472_v48  ;;  %874 = vmatpush1.msra.mxu0 %v828_v47 }
  0x70   :  { %546 = vmatpush2.msra.mxu1 %v471_v49  ;;  %875 = vmatprep.subr.mxu0 %v1154_v3 }
  0x71   :  { %547 = vmatprep.subr.mxu1 %v470_v50 }
  0x72   :  { %548 = vmatpush2.msra.mxu1 %v469_v51 }
  0x73   :  { %549 = vmatprep.subr.mxu1 %v468_v52 }
  0x74   :  { %550 = vmatpush2.msra.mxu1 %v467_v53  ;;  %v827_v53 = vld [vmem:[%s2090_s5 + $0x38] sm:$0xff] }
  0x75   :  { %551 = vmatprep.subr.mxu1 %v466_v54  ;;  %876 = vmatpush1.msra.mxu0 %v827_v53 }
  0x76   :  { %552 = vmatpush2.msra.mxu1 %v465_v55  ;;  %877 = vmatprep.subr.mxu0 %v1154_v3 }
  0x77   :  { %553 = vmatprep.subr.mxu1 %v464_v56  ;;  %v826_v56 = vld [vmem:[%s2090_s5 + $0x30] sm:$0xff] }
  0x78   :  { %554 = vmatpush2.msra.mxu1 %v463_v57  ;;  %878 = vmatpush1.msra.mxu0 %v826_v56  ;;  %v847_v56 = vld [vmem:[%s2090_s5 + $0xd8] sm:$0xff] }
  0x79   :  { %555 = vmatprep.subr.mxu1 %v462_v58  ;;  %879 = vmatprep.subr.mxu0 %v1154_v3 }
  0x7a   :  { %556 = vmatpush2.msra.mxu1 %v461_v59 }
  0x7b   :  { %557 = vmatprep.subr.mxu1 %v460_v60 }
  0x7c   :  { %558 = vmatpush2.msra.mxu1 %v459_v61 }
  0x7d   :  { %559 = vmatprep.subr.mxu1 %v458_v62  ;;  %v825_v62 = vld [vmem:[%s2090_s5 + $0x28] sm:$0xff] }
  0x7e   :  { %560 = vmatpush2.msra.mxu1 %v457_v63  ;;  %880 = vmatpush1.msra.mxu0 %v825_v62 }
  0x7f   :  { %561 = vmatprep.subr.mxu1 %v456_v0  ;;  %881 = vmatprep.subr.mxu0 %v1154_v3 }
  0x80   :  { %562 = vmatpush2.msra.mxu1 %v455_v1  ;;  %v824_v1 = vld [vmem:[%s2090_s5 + $0x20] sm:$0xff] }
  0x81   :  { %882 = vmatpush1.msra.mxu0 %v824_v1 }
  0x82   :  { %883 = vmatprep.subr.mxu0 %v1154_v3 }
  0xe2   :  { %v168_v10 = vpop.f32.mrf.mxu0  ;;  %v1627_v11 = vpop.f32.mrf.mxu1 }
  0xe3   :  { %v169_v12 = vadd.f32 %v168_v10, %v1621_v8 }
  0xe4   :  { %v170_v13 = vpop.f32.mrf.mxu0  ;;  %v1630_v14 = vpop.f32.mrf.mxu1 }
  0xe5   :  { %v171_v15 = vadd.f32 %v170_v13, %v1625_v9  ;;  %v359_v21 = vmax.f32 %v169_v12, 0.0 }
  0xe6   :  { %v174_v16 = vpop.f32.mrf.mxu0  ;;  %v1633_v17 = vpop.f32.mrf.mxu1 }
  0xe7   :  { %v360_v18 = vmax.f32 %v171_v15, 0.0  ;;  %v175_v22 = vadd.f32 %v174_v16, %v1621_v8  ;;  %v823_v15 = vld [vmem:[%s2090_s5 + $0x18] sm:$0xff] }
  0xe8   :  { %v176_v23 = vpop.f32.mrf.mxu0  ;;  %v1642_v24 = vpop.f32.mrf.mxu1  ;;  %884 = vmatpush1.msra.mxu0 %v823_v15 }
  0xe9   :  { %v177_v25 = vadd.f32 %v176_v23, %v1625_v9  ;;  %563 = vmatprep.mubr.f32.mxu1 %v360_v18  ;;  %v361_v30 = vmax.f32 %v175_v22, 0.0  ;;  %885 = vmatprep.subr.mxu0 %v1154_v3 }
  0xea   :  { %v180_v27 = vpop.f32.mrf.mxu0  ;;  %564 = vmatmul.mubr.f32.vlgmr.msra.gmra.mxu1 %v359_v21  ;;  %v1654_v33 = vpop.f32.mrf.mxu1  ;;  %886 = vmatpush1.msra.mxu0 %v822_v19 }
  0xeb   :  { %v362_v28 = vmax.f32 %v177_v25, 0.0  ;;  %v181_v31 = vadd.f32 %v180_v27, %v1621_v8  ;;  %887 = vmatprep.subr.mxu0 %v1154_v3 }
  0xec   :  { %v182_v32 = vpop.f32.mrf.mxu0  ;;  %v1666_v42 = vpop.f32.mrf.mxu1  ;;  %888 = vmatpush1.msra.mxu0 %v821_v26  ;;  %v842_v26 = vld [vmem:[%s2090_s5 + $0xb0] sm:$0xff] }
  0xed   :  { %v183_v34 = vadd.f32 %v182_v32, %v1625_v9  ;;  %569 = vmatprep.mubr.f32.mxu1 %v362_v28  ;;  %v363_v39 = vmax.f32 %v181_v31, 0.0  ;;  %889 = vmatprep.subr.mxu0 %v1154_v3 }
  0xee   :  { %v186_v36 = vpop.f32.mrf.mxu0  ;;  %570 = vmatmul.mubr.f32.gmra.mxu1 %v361_v30  ;;  %v1678_v51 = vpop.f32.mrf.mxu1  ;;  %890 = vmatpush1.msra.mxu0 %v820_v29 }
  0xef   :  { %v364_v37 = vmax.f32 %v183_v34, 0.0  ;;  %v187_v40 = vadd.f32 %v186_v36, %v1621_v8  ;;  %v851_v36 = vld [vmem:[%s2090_s5 + $0xf8] sm:$0xff]  ;;  %891 = vmatprep.subr.mxu0 %v1154_v3 }
  0xf0   :  { %v188_v41 = vpop.f32.mrf.mxu0  ;;  %v1690_v60 = vpop.f32.mrf.mxu1  ;;  %892 = vmatpush2.msra.mxu0 %v851_v36 }
  0xf1   :  { %v189_v43 = vadd.f32 %v188_v41, %v1625_v9  ;;  %575 = vmatprep.mubr.f32.mxu1 %v364_v37  ;;  %v365_v48 = vmax.f32 %v187_v40, 0.0  ;;  %893 = vmatprep.subr.mxu0 %v1154_v3 }
  0xf2   :  { %v192_v45 = vpop.f32.mrf.mxu0  ;;  %576 = vmatmul.mubr.f32.gmra.mxu1 %v363_v39  ;;  %v1702_v12 = vpop.f32.mrf.mxu1  ;;  %v850_v39 = vld [vmem:[%s2090_s5 + $0xf0] sm:$0xff] }
  0xf3   :  { %v366_v46 = vmax.f32 %v189_v43, 0.0  ;;  %v193_v49 = vadd.f32 %v192_v45, %v1621_v8  ;;  %894 = vmatpush2.msra.mxu0 %v850_v39 }
  0xf4   :  { %v194_v50 = vpop.f32.mrf.mxu0  ;;  %v1714_v23 = vpop.f32.mrf.mxu1  ;;  %895 = vmatprep.subr.mxu0 %v1154_v3 }
  0xf5   :  { %v195_v52 = vadd.f32 %v194_v50, %v1625_v9  ;;  %581 = vmatprep.mubr.f32.mxu1 %v366_v46  ;;  %v367_v57 = vmax.f32 %v193_v49, 0.0  ;;  %v849_v46 = vld [vmem:[%s2090_s5 + $0xe8] sm:$0xff]  ;;  %v848_v49 = vld [vmem:[%s2090_s5 + $0xe0] sm:$0xff] }
  0xf6   :  { %v198_v54 = vpop.f32.mrf.mxu0  ;;  %582 = vmatmul.mubr.f32.gmra.mxu1 %v365_v48  ;;  %v1726_v34 = vpop.f32.mrf.mxu1  ;;  %896 = vmatpush2.msra.mxu0 %v849_v46 }
  0xf7   :  { %v368_v55 = vmax.f32 %v195_v52, 0.0  ;;  %v199_v58 = vadd.f32 %v198_v54, %v1621_v8  ;;  %897 = vmatprep.subr.mxu0 %v1154_v3 }
  0xf8   :  { %v200_v59 = vpop.f32.mrf.mxu0  ;;  %v1738_v44 = vpop.f32.mrf.mxu1  ;;  %898 = vmatpush2.msra.mxu0 %v848_v49 }
  0xf9   :  { %v201_v61 = vadd.f32 %v200_v59, %v1625_v9  ;;  %587 = vmatprep.mubr.f32.mxu1 %v368_v55  ;;  %v369_v2 = vmax.f32 %v199_v58, 0.0  ;;  %899 = vmatprep.subr.mxu0 %v1154_v3  ;;  %v846_v59 = vld [vmem:[%s2090_s5 + $0xd0] sm:$0xff] }
  0xfa   :  { %v204_v63 = vpop.f32.mrf.mxu0  ;;  %588 = vmatmul.mubr.f32.gmra.mxu1 %v367_v57  ;;  %v1750_v54 = vpop.f32.mrf.mxu1  ;;  %900 = vmatpush2.msra.mxu0 %v847_v56 }
  0xfb   :  { %v370_v0 = vmax.f32 %v201_v61, 0.0  ;;  %v205_v6 = vadd.f32 %v204_v63, %v1621_v8  ;;  %901 = vmatprep.subr.mxu0 %v1154_v3 }
  0xfc   :  { %v206_v10 = vpop.f32.mrf.mxu0  ;;  %902 = vmatpush2.msra.mxu0 %v846_v59 }
  0xfd   :  { %v207_v13 = vadd.f32 %v206_v10, %v1625_v9  ;;  %593 = vmatprep.mubr.f32.mxu1 %v370_v0  ;;  %v371_v20 = vmax.f32 %v205_v6, 0.0  ;;  %v1762_v0 = vpop.f32.mrf.mxu1  ;;  %903 = vmatprep.subr.mxu0 %v1154_v3 }
  0xfe   :  { %v210_v16 = vpop.f32.mrf.mxu0  ;;  %594 = vmatmul.mubr.f32.gmra.mxu1 %v369_v2  ;;  %v845_v2 = vld [vmem:[%s2090_s5 + $0xc8] sm:$0xff] }
  0xff   :  { %v372_v18 = vmax.f32 %v207_v13, 0.0  ;;  %v211_v21 = vadd.f32 %v210_v16, %v1621_v8  ;;  %v844_v13 = vld [vmem:[%s2090_s5 + $0xc0] sm:$0xff]  ;;  %v1774_v19 = vpop.f32.mrf.mxu1  ;;  %904 = vmatpush2.msra.mxu0 %v845_v2 }
 0x100   :  { %v212_v22 = vpop.f32.mrf.mxu0  ;;  %905 = vmatprep.subr.mxu0 %v1154_v3 }
 0x101   :  { %v213_v25 = vadd.f32 %v212_v22, %v1625_v9  ;;  %599 = vmatprep.mubr.f32.mxu1 %v372_v18  ;;  %v373_v30 = vmax.f32 %v211_v21, 0.0  ;;  %v843_v21 = vld [vmem:[%s2090_s5 + $0xb8] sm:$0xff]  ;;  %906 = vmatpush2.msra.mxu0 %v844_v13 }
 0x102   :  { %v216_v27 = vpop.f32.mrf.mxu0  ;;  %600 = vmatmul.mubr.f32.gmra.mxu1 %v371_v20  ;;  %907 = vmatprep.subr.mxu0 %v1154_v3 }
 0x103   :  { %v374_v28 = vmax.f32 %v213_v25, 0.0  ;;  %v217_v31 = vadd.f32 %v216_v27, %v1621_v8  ;;  %908 = vmatpush2.msra.mxu0 %v843_v21  ;;  %v836_v21 = vld [vmem:[%s2090_s5 + $0x80] sm:$0xff] }
 0x104   :  { %v218_v32 = vpop.f32.mrf.mxu0  ;;  %909 = vmatprep.subr.mxu0 %v1154_v3 }
 0x105   :  { %v219_v35 = vadd.f32 %v218_v32, %v1625_v9  ;;  %605 = vmatprep.mubr.f32.mxu1 %v374_v28  ;;  %v375_v40 = vmax.f32 %v217_v31, 0.0  ;;  %v841_v32 = vld [vmem:[%s2090_s5 + $0xa8] sm:$0xff]  ;;  %910 = vmatpush2.msra.mxu0 %v842_v26  ;;  %v289_v26 = vadd.f32 %v1702_v12, %v1621_v8  ;;  %v301_v12 = vadd.f32 %v1750_v54, %v1621_v8 }
 0x106   :  { %v222_v37 = vpop.f32.mrf.mxu0  ;;  %606 = vmatmul.mubr.f32.gmra.mxu1 %v373_v30  ;;  %v1786_v30 = vpop.f32.mrf.mxu1  ;;  %911 = vmatprep.subr.mxu0 %v1154_v3 }
 0x107   :  { %v376_v38 = vmax.f32 %v219_v35, 0.0  ;;  %v223_v41 = vadd.f32 %v222_v37, %v1621_v8  ;;  %v840_v37 = vld [vmem:[%s2090_s5 + $0xa0] sm:$0xff]  ;;  %912 = vmatpush2.msra.mxu0 %v841_v32 }
 0x108   :  { %v224_v43 = vpop.f32.mrf.mxu0  ;;  %913 = vmatprep.subr.mxu0 %v1154_v3 }
 0x109   :  { %v225_v45 = vadd.f32 %v224_v43, %v1625_v9  ;;  %611 = vmatprep.mubr.f32.mxu1 %v376_v38  ;;  %v377_v50 = vmax.f32 %v223_v41, 0.0  ;;  %v1798_v41 = vpop.f32.mrf.mxu1  ;;  %914 = vmatpush2.msra.mxu0 %v840_v37 }
 0x10a   :  { %v228_v47 = vpop.f32.mrf.mxu0  ;;  %612 = vmatmul.mubr.f32.gmra.mxu1 %v375_v40  ;;  %915 = vmatprep.subr.mxu0 %v1154_v3  ;;  %v313_v54 = vadd.f32 %v1798_v41, %v1621_v8 }
 0x10b   :  { %v378_v48 = vmax.f32 %v225_v45, 0.0  ;;  %v229_v52 = vadd.f32 %v228_v47, %v1621_v8  ;;  %v267_v47 = vadd.f32 %v1630_v14, %v1625_v9  ;;  %v265_v14 = vadd.f32 %v1627_v11, %v1621_v8 }
 0x10c   :  { %v230_v53 = vpop.f32.mrf.mxu0 }
 0x10d   :  { %v231_v55 = vadd.f32 %v230_v53, %v1625_v9  ;;  %617 = vmatprep.mubr.f32.mxu1 %v378_v48  ;;  %v379_v61 = vmax.f32 %v229_v52, 0.0  ;;  %v1806_v52 = vpop.f32.mrf.mxu1  ;;  %v392_v56 = vmax.f32 %v267_v47, 0.0 }
 0x10e   :  { %v234_v57 = vpop.f32.mrf.mxu0  ;;  %618 = vmatmul.mubr.f32.gmra.mxu1 %v377_v50 }
 0x10f   :  { %v380_v58 = vmax.f32 %v231_v55, 0.0  ;;  %v235_v62 = vadd.f32 %v234_v57, %v1621_v8  ;;  %v273_v57 = vadd.f32 %v1642_v24, %v1625_v9  ;;  %v1813_v59 = vpop.f32.mrf.mxu1  ;;  %v839_v24 = vld [vmem:[%s2090_s5 + $0x98] sm:$0xff] }
 0x110   :  { %v236_v63 = vpop.f32.mrf.mxu0  ;;  %916 = vmatpush2.msra.mxu0 %v839_v24 }
 0x111   :  { %v237_v1 = vadd.f32 %v236_v63, %v1625_v9  ;;  %623 = vmatprep.mubr.f32.mxu1 %v380_v58  ;;  %v381_v15 = vmax.f32 %v235_v62, 0.0  ;;  %v279_v62 = vadd.f32 %v1666_v42, %v1625_v9  ;;  %v391_v63 = vmax.f32 %v265_v14, 0.0  ;;  %v320_v2 = vpop.f32.mrf.mxu1  ;;  %917 = vmatprep.subr.mxu0 %v1154_v3 }
 0x112   :  { %v240_v6 = vpop.f32.mrf.mxu0  ;;  %624 = vmatmul.mubr.f32.gmra.mxu1 %v379_v61  ;;  %v394_v61 = vmax.f32 %v273_v57, 0.0  ;;  %v277_v42 = vadd.f32 %v1654_v33, %v1621_v8  ;;  %v291_v33 = vadd.f32 %v1714_v23, %v1625_v9 }
 0x113   :  { %v382_v10 = vmax.f32 %v237_v1, 0.0  ;;  %v241_v16 = vadd.f32 %v240_v6, %v1621_v8  ;;  %v271_v1 = vadd.f32 %v1633_v17, %v1621_v8  ;;  %v396_v11 = vmax.f32 %v279_v62, 0.0  ;;  %v1826_v13 = vpop.f32.mrf.mxu1  ;;  %v838_v17 = vld [vmem:[%s2090_s5 + $0x90] sm:$0xff] }
 0x114   :  { %v242_v18 = vpop.f32.mrf.mxu0  ;;  %v285_v6 = vadd.f32 %v1690_v60, %v1625_v9  ;;  %918 = vmatpush2.msra.mxu0 %v838_v17  ;;  %v837_v60 = vld [vmem:[%s2090_s5 + $0x88] sm:$0xff]  ;;  %v325_v41 = vadd.f32 %v1826_v13, %v1621_v8 }
 0x115   :  { %v243_v20 = vadd.f32 %v242_v18, %v1625_v9  ;;  %629 = vmatprep.mubr.f32.mxu1 %v382_v10  ;;  %v383_v27 = vmax.f32 %v241_v16, 0.0  ;;  %v393_v10 = vmax.f32 %v271_v1, 0.0  ;;  %919 = vmatprep.subr.mxu0 %v1154_v3  ;;  %v395_v16 = vmax.f32 %v277_v42, 0.0 }
 0x116   :  { %v246_v22 = vpop.f32.mrf.mxu0  ;;  %630 = vmatmul.mubr.f32.gmra.mxu1 %v381_v15  ;;  %v398_v15 = vmax.f32 %v285_v6, 0.0  ;;  %920 = vmatpush2.msra.mxu0 %v837_v60  ;;  %v283_v18 = vadd.f32 %v1678_v51, %v1621_v8 }
 0x117   :  { %v384_v25 = vmax.f32 %v243_v20, 0.0  ;;  %v247_v28 = vadd.f32 %v246_v22, %v1621_v8  ;;  %v326_v20 = vpop.f32.mrf.mxu1  ;;  %921 = vmatprep.subr.mxu0 %v1154_v3  ;;  %v400_v22 = vmax.f32 %v291_v33, 0.0  ;;  %v303_v3 = vadd.f32 %v1762_v0, %v1625_v9 }
 0x118   :  { %v248_v29 = vpop.f32.mrf.mxu0  ;;  %922 = vmatpush2.msra.mxu0 %v836_v21  ;;  %v397_v23 = vmax.f32 %v283_v18, 0.0  ;;  %v315_v0 = vadd.f32 %v1806_v52, %v1625_v9  ;;  %v327_v47 = vadd.f32 %v326_v20, %v1625_v9  ;;  %v487_v21 = vld [vmem:[%s2091_s4] sm:$0x3] }
 0x119   :  { %v249_v31 = vadd.f32 %v248_v29, %v1625_v9  ;;  %635 = vmatprep.mubr.f32.mxu1 %v384_v25  ;;  %v385_v38 = vmax.f32 %v247_v28, 0.0  ;;  %v297_v25 = vadd.f32 %v1738_v44, %v1625_v9  ;;  %v399_v28 = vmax.f32 %v289_v26, 0.0 }
 0x11a   :  { %v252_v35 = vpop.f32.mrf.mxu0  ;;  %636 = vmatmul.mubr.f32.gmra.mxu1 %v383_v27  ;;  %v330_v27 = vpop.f32.mrf.mxu1  ;;  %v295_v29 = vadd.f32 %v1726_v34, %v1621_v8  ;;  %v404_v32 = vmax.f32 %v303_v3, 0.0  ;;  %v309_v44 = vadd.f32 %v1786_v30, %v1625_v9  ;;  %v307_v34 = vadd.f32 %v1774_v19, %v1621_v8 }
 0x11b   :  { %v386_v36 = vmax.f32 %v249_v31, 0.0  ;;  %v253_v39 = vadd.f32 %v252_v35, %v1621_v8  ;;  %v402_v51 = vmax.f32 %v297_v25, 0.0  ;;  %v321_v30 = vadd.f32 %v320_v2, %v1625_v9 }
 0x11c   :  { %v254_v40 = vpop.f32.mrf.mxu0  ;;  %v332_v31 = vpop.f32.mrf.mxu1  ;;  %v401_v35 = vmax.f32 %v295_v29, 0.0  ;;  %v406_v37 = vmax.f32 %v309_v44, 0.0  ;;  %v319_v19 = vadd.f32 %v1813_v59, %v1621_v8  ;;  %v331_v14 = vadd.f32 %v330_v27, %v1621_v8 }
 0x11d   :  { %v255_v43 = vadd.f32 %v254_v40, %v1625_v9  ;;  %641 = vmatprep.mubr.f32.mxu1 %v386_v36  ;;  %v387_v48 = vmax.f32 %v253_v39, 0.0  ;;  %v408_v40 = vmax.f32 %v315_v0, 0.0  ;;  %v333_v52 = vadd.f32 %v332_v31, %v1625_v9 }
 0x11e   :  { %v258_v45 = vpop.f32.mrf.mxu0  ;;  %642 = vmatmul.mubr.f32.gmra.mxu1 %v385_v38  ;;  %v336_v36 = vpop.f32.mrf.mxu1  ;;  %v403_v38 = vmax.f32 %v301_v12, 0.0 }
 0x11f   :  { %v388_v46 = vmax.f32 %v255_v43, 0.0  ;;  %v259_v49 = vadd.f32 %v258_v45, %v1621_v8  ;;  %v405_v43 = vmax.f32 %v307_v34, 0.0  ;;  %v337_v1 = vadd.f32 %v336_v36, %v1621_v8 }
 0x120   :  { %v260_v50 = vpop.f32.mrf.mxu0  ;;  %v338_v39 = vpop.f32.mrf.mxu1 }
 0x121   :  { %v261_v53 = vadd.f32 %v260_v50, %v1625_v9  ;;  %647 = vmatprep.mubr.f32.mxu1 %v388_v46  ;;  %v389_v58 = vmax.f32 %v259_v49, 0.0  ;;  %v410_v46 = vmax.f32 %v321_v30, 0.0  ;;  %v412_v50 = vmax.f32 %v327_v47, 0.0 }
 0x122   :  { %648 = vmatmul.mubr.f32.gmra.mxu1 %v387_v48  ;;  %v342_v45 = vpop.f32.mrf.mxu1  ;;  %v407_v48 = vmax.f32 %v313_v54, 0.0  ;;  %v339_v57 = vadd.f32 %v338_v39, %v1625_v9  ;;  %v415_v6 = vmax.f32 %v337_v1, 0.0 }
 0x123   :  { %v390_v55 = vmax.f32 %v261_v53, 0.0  ;;  %v409_v53 = vmax.f32 %v319_v19, 0.0 }
 0x124   :  { %v344_v49 = vpop.f32.mrf.mxu1 }
 0x125   :  { %653 = vmatprep.mubr.f32.mxu1 %v390_v55  ;;  %v345_v62 = vadd.f32 %v344_v49, %v1625_v9 }
 0x126   :  { %654 = vmatmul.mubr.f32.gmra.mxu1 %v389_v58  ;;  %v348_v55 = vpop.f32.mrf.mxu1  ;;  %v411_v58 = vmax.f32 %v325_v41, 0.0 }
 0x127   :  { %659 = vmatprep.mubr.f32.mxu1 %v392_v56  ;;  %v414_v56 = vmax.f32 %v333_v52, 0.0  ;;  %v418_v24 = vmax.f32 %v345_v62, 0.0 }
 0x128   :  { %v350_v59 = vpop.f32.mrf.mxu1 }
 0x12a   :  { %660 = vmatmul.mubr.f32.gmra.mxu1 %v391_v63  ;;  %v413_v63 = vmax.f32 %v331_v14, 0.0  ;;  %v354_v2 = vpop.f32.mrf.mxu1 }
 0x12b   :  { %665 = vmatprep.mubr.f32.mxu1 %v394_v61  ;;  %v416_v61 = vmax.f32 %v339_v57, 0.0  ;;  %v355_v18 = vadd.f32 %v354_v2, %v1621_v8 }
 0x12c   :  { %v356_v42 = vpop.f32.mrf.mxu1 }
 0x12d   :  { %v357_v17 = vadd.f32 %v356_v42, %v1625_v9  ;;  %v421_v20 = vmax.f32 %v355_v18, 0.0 }
 0x12e   :  { %666 = vmatmul.mubr.f32.gmra.mxu1 %v393_v10  ;;  %v343_v10 = vadd.f32 %v342_v45, %v1621_v8 }
 0x12f   :  { %671 = vmatprep.mubr.f32.mxu1 %v396_v11  ;;  %v351_v11 = vadd.f32 %v350_v59, %v1625_v9  ;;  %v422_v33 = vmax.f32 %v357_v17, 0.0  ;;  %v1883_v9 = vrot.slane %v487_v21, %v94_v5 }
 0x130   :  { %v417_v60 = vmax.f32 %v343_v10, 0.0 }
 0x131   :  { %v420_v13 = vmax.f32 %v351_v11, 0.0 }
 0x132   :  { %672 = vmatmul.mubr.f32.gmra.mxu1 %v395_v16 }
 0x133   :  { %677 = vmatprep.mubr.f32.mxu1 %v398_v15  ;;  %v349_v15 = vadd.f32 %v348_v55, %v1621_v8 }
 0x135   :  { %v419_v16 = vmax.f32 %v349_v15, 0.0 }
 0x136   :  { %678 = vmatmul.mubr.f32.gmra.mxu1 %v397_v23 }
 0x137   :  { %683 = vmatprep.mubr.f32.mxu1 %v400_v22  ;;  %v1887_v22 = vrot.slane %v487_v21, %v98_v7 }
 0x13a   :  { %684 = vmatmul.mubr.f32.gmra.mxu1 %v399_v28 }
 0x13b   :  { %689 = vmatprep.mubr.f32.mxu1 %v402_v51 }
 0x13e   :  { %690 = vmatmul.mubr.f32.gmra.mxu1 %v401_v35 }
 0x13f   :  { %695 = vmatprep.mubr.f32.mxu1 %v404_v32 }
 0x142   :  { %696 = vmatmul.mubr.f32.gmra.mxu1 %v403_v38 }
 0x143   :  { %701 = vmatprep.mubr.f32.mxu1 %v406_v37 }
 0x146   :  { %702 = vmatmul.mubr.f32.gmra.mxu1 %v405_v43 }
 0x147   :  { %707 = vmatprep.mubr.f32.mxu1 %v408_v40 }
 0x14a   :  { %708 = vmatmul.mubr.f32.gmra.mxu1 %v407_v48 }
 0x14b   :  { %713 = vmatprep.mubr.f32.mxu1 %v410_v46 }
 0x14e   :  { %714 = vmatmul.mubr.f32.gmra.mxu1 %v409_v53 }
 0x14f   :  { %719 = vmatprep.mubr.f32.mxu1 %v412_v50 }
 0x152   :  { %720 = vmatmul.mubr.f32.gmra.mxu1 %v411_v58 }
 0x153   :  { %725 = vmatprep.mubr.f32.mxu1 %v414_v56 }
 0x156   :  { %726 = vmatmul.mubr.f32.gmra.mxu1 %v413_v63 }
 0x157   :  { %731 = vmatprep.mubr.f32.mxu1 %v416_v61 }
 0x15a   :  { %732 = vmatmul.mubr.f32.gmra.mxu1 %v415_v6 }
 0x15b   :  { %737 = vmatprep.mubr.f32.mxu1 %v418_v24 }
 0x15e   :  { %738 = vmatmul.mubr.f32.gmra.mxu1 %v417_v60 }
 0x15f   :  { %743 = vmatprep.mubr.f32.mxu1 %v420_v13 }
 0x162   :  { %744 = vmatmul.mubr.f32.gmra.mxu1 %v419_v16 }
 0x163   :  { %749 = vmatprep.mubr.f32.mxu1 %v422_v33 }
 0x166   :  { %750 = vmatmul.mubr.f32.gmra.mxu1 %v421_v20 }
 0x1aa   :  { %v565_v25 = vpop.f32.mrf.mxu1 }
 0x1ab   :  { %v566_v23 = vadd.f32 %v565_v25, %v1883_v9 }
 0x1ac   :  { %v567_v8 = vpop.f32.mrf.mxu1 }
 0x1ad   :  { %v568_v26 = vadd.f32 %v567_v8, %v1887_v22  ;;  %v756_v3 = vmax.f32 %v566_v23, 0.0 }
 0x1ae   :  { %v571_v27 = vpop.f32.mrf.mxu1 }
 0x1af   :  { %v757_v51 = vmax.f32 %v568_v26, 0.0  ;;  %v572_v28 = vadd.f32 %v571_v27, %v1883_v9 }
 0x1b0   :  { %v573_v29 = vpop.f32.mrf.mxu1 }
 0x1b1   :  { %v574_v31 = vadd.f32 %v573_v29, %v1887_v22  ;;  %923 = vmatprep.mubr.f32.mxu0 %v757_v51  ;;  %v758_v7 = vmax.f32 %v572_v28, 0.0 }
 0x1b2   :  { %v577_v5 = vpop.f32.mrf.mxu1  ;;  %924 = vmatmul.mubr.f32.vlgmr.msra.gmra.mxu0 %v756_v3 }
 0x1b3   :  { %v759_v4 = vmax.f32 %v574_v31, 0.0  ;;  %v578_v32 = vadd.f32 %v577_v5, %v1883_v9 }
 0x1b4   :  { %v579_v44 = vpop.f32.mrf.mxu1 }
 0x1b5   :  { %v580_v35 = vadd.f32 %v579_v44, %v1887_v22  ;;  %928 = vmatprep.mubr.f32.mxu0 %v759_v4  ;;  %v760_v37 = vmax.f32 %v578_v32, 0.0 }
 0x1b6   :  { %v583_v12 = vpop.f32.mrf.mxu1  ;;  %929 = vmatmul.mubr.f32.gmra.mxu0 %v758_v7 }
 0x1b7   :  { %v761_v36 = vmax.f32 %v580_v35, 0.0  ;;  %v584_v0 = vadd.f32 %v583_v12, %v1883_v9 }
 0x1b8   :  { %v585_v38 = vpop.f32.mrf.mxu1 }
 0x1b9   :  { %v586_v34 = vadd.f32 %v585_v38, %v1887_v22  ;;  %933 = vmatprep.mubr.f32.mxu0 %v761_v36  ;;  %v762_v30 = vmax.f32 %v584_v0, 0.0 }
 0x1ba   :  { %v589_v39 = vpop.f32.mrf.mxu1  ;;  %934 = vmatmul.mubr.f32.gmra.mxu0 %v760_v37 }
 0x1bb   :  { %v763_v40 = vmax.f32 %v586_v34, 0.0  ;;  %v590_v43 = vadd.f32 %v589_v39, %v1883_v9 }
 0x1bc   :  { %v591_v54 = vpop.f32.mrf.mxu1 }
 0x1bd   :  { %v592_v45 = vadd.f32 %v591_v54, %v1887_v22  ;;  %938 = vmatprep.mubr.f32.mxu0 %v763_v40  ;;  %v764_v48 = vmax.f32 %v590_v43, 0.0 }
 0x1be   :  { %v595_v46 = vpop.f32.mrf.mxu1  ;;  %939 = vmatmul.mubr.f32.gmra.mxu0 %v762_v30 }
 0x1bf   :  { %v765_v47 = vmax.f32 %v592_v45, 0.0  ;;  %v596_v19 = vadd.f32 %v595_v46, %v1883_v9 }
 0x1c0   :  { %v597_v49 = vpop.f32.mrf.mxu1 }
 0x1c1   :  { %v598_v50 = vadd.f32 %v597_v49, %v1887_v22  ;;  %943 = vmatprep.mubr.f32.mxu0 %v765_v47  ;;  %v766_v41 = vmax.f32 %v596_v19, 0.0 }
 0x1c2   :  { %v601_v52 = vpop.f32.mrf.mxu1  ;;  %944 = vmatmul.mubr.f32.gmra.mxu0 %v764_v48 }
 0x1c3   :  { %v767_v53 = vmax.f32 %v598_v50, 0.0  ;;  %v602_v55 = vadd.f32 %v601_v52, %v1883_v9 }
 0x1c4   :  { %v603_v56 = vpop.f32.mrf.mxu1 }
 0x1c5   :  { %v604_v57 = vadd.f32 %v603_v56, %v1887_v22  ;;  %948 = vmatprep.mubr.f32.mxu0 %v767_v53  ;;  %v768_v59 = vmax.f32 %v602_v55, 0.0 }
 0x1c6   :  { %v607_v58 = vpop.f32.mrf.mxu1  ;;  %949 = vmatmul.mubr.f32.gmra.mxu0 %v766_v41 }
 0x1c7   :  { %v769_v14 = vmax.f32 %v604_v57, 0.0  ;;  %v608_v61 = vadd.f32 %v607_v58, %v1883_v9 }
 0x1c8   :  { %v609_v62 = vpop.f32.mrf.mxu1 }
 0x1c9   :  { %v610_v63 = vadd.f32 %v609_v62, %v1887_v22  ;;  %953 = vmatprep.mubr.f32.mxu0 %v769_v14  ;;  %v770_v24 = vmax.f32 %v608_v61, 0.0 }
 0x1ca   :  { %v613_v1 = vpop.f32.mrf.mxu1  ;;  %954 = vmatmul.mubr.f32.gmra.mxu0 %v768_v59 }
 0x1cb   :  { %v771_v2 = vmax.f32 %v610_v63, 0.0  ;;  %v614_v11 = vadd.f32 %v613_v1, %v1883_v9 }
 0x1cc   :  { %v615_v6 = vpop.f32.mrf.mxu1 }
 0x1cd   :  { %v616_v10 = vadd.f32 %v615_v6, %v1887_v22  ;;  %958 = vmatprep.mubr.f32.mxu0 %v771_v2  ;;  %v772_v17 = vmax.f32 %v614_v11, 0.0 }
 0x1ce   :  { %v619_v42 = vpop.f32.mrf.mxu1  ;;  %959 = vmatmul.mubr.f32.gmra.mxu0 %v770_v24 }
 0x1cf   :  { %v773_v13 = vmax.f32 %v616_v10, 0.0  ;;  %v620_v60 = vadd.f32 %v619_v42, %v1883_v9 }
 0x1d0   :  { %v621_v15 = vpop.f32.mrf.mxu1 }
 0x1d1   :  { %v622_v33 = vadd.f32 %v621_v15, %v1887_v22  ;;  %963 = vmatprep.mubr.f32.mxu0 %v773_v13  ;;  %v774_v20 = vmax.f32 %v620_v60, 0.0 }
 0x1d2   :  { %v625_v16 = vpop.f32.mrf.mxu1  ;;  %964 = vmatmul.mubr.f32.gmra.mxu0 %v772_v17 }
 0x1d3   :  { %v775_v18 = vmax.f32 %v622_v33, 0.0  ;;  %v626_v21 = vadd.f32 %v625_v16, %v1883_v9 }
 0x1d4   :  { %v627_v25 = vpop.f32.mrf.mxu1 }
 0x1d5   :  { %v628_v23 = vadd.f32 %v627_v25, %v1887_v22  ;;  %968 = vmatprep.mubr.f32.mxu0 %v775_v18  ;;  %v776_v27 = vmax.f32 %v626_v21, 0.0 }
 0x1d6   :  { %v631_v8 = vpop.f32.mrf.mxu1  ;;  %969 = vmatmul.mubr.f32.gmra.mxu0 %v774_v20 }
 0x1d7   :  { %v777_v26 = vmax.f32 %v628_v23, 0.0  ;;  %v632_v51 = vadd.f32 %v631_v8, %v1883_v9 }
 0x1d8   :  { %v633_v3 = vpop.f32.mrf.mxu1 }
 0x1d9   :  { %v634_v28 = vadd.f32 %v633_v3, %v1887_v22  ;;  %973 = vmatprep.mubr.f32.mxu0 %v777_v26  ;;  %v778_v5 = vmax.f32 %v632_v51, 0.0 }
 0x1da   :  { %v637_v29 = vpop.f32.mrf.mxu1  ;;  %974 = vmatmul.mubr.f32.gmra.mxu0 %v776_v27 }
 0x1db   :  { %v779_v31 = vmax.f32 %v634_v28, 0.0  ;;  %v638_v4 = vadd.f32 %v637_v29, %v1883_v9 }
 0x1dc   :  { %v639_v7 = vpop.f32.mrf.mxu1 }
 0x1dd   :  { %v640_v32 = vadd.f32 %v639_v7, %v1887_v22  ;;  %978 = vmatprep.mubr.f32.mxu0 %v779_v31  ;;  %v780_v12 = vmax.f32 %v638_v4, 0.0 }
 0x1de   :  { %v643_v44 = vpop.f32.mrf.mxu1  ;;  %979 = vmatmul.mubr.f32.gmra.mxu0 %v778_v5 }
 0x1df   :  { %v781_v35 = vmax.f32 %v640_v32, 0.0  ;;  %v644_v36 = vadd.f32 %v643_v44, %v1883_v9 }
 0x1e0   :  { %v645_v37 = vpop.f32.mrf.mxu1 }
 0x1e1   :  { %v646_v0 = vadd.f32 %v645_v37, %v1887_v22  ;;  %983 = vmatprep.mubr.f32.mxu0 %v781_v35  ;;  %v782_v39 = vmax.f32 %v644_v36, 0.0 }
 0x1e2   :  { %v649_v38 = vpop.f32.mrf.mxu1  ;;  %984 = vmatmul.mubr.f32.gmra.mxu0 %v780_v12 }
 0x1e3   :  { %v783_v34 = vmax.f32 %v646_v0, 0.0  ;;  %v650_v40 = vadd.f32 %v649_v38, %v1883_v9 }
 0x1e4   :  { %v651_v30 = vpop.f32.mrf.mxu1 }
 0x1e5   :  { %v652_v43 = vadd.f32 %v651_v30, %v1887_v22  ;;  %988 = vmatprep.mubr.f32.mxu0 %v783_v34  ;;  %v784_v46 = vmax.f32 %v650_v40, 0.0 }
 0x1e6   :  { %v655_v54 = vpop.f32.mrf.mxu1  ;;  %989 = vmatmul.mubr.f32.gmra.mxu0 %v782_v39 }
 0x1e7   :  { %v785_v45 = vmax.f32 %v652_v43, 0.0  ;;  %v656_v47 = vadd.f32 %v655_v54, %v1883_v9 }
 0x1e8   :  { %v657_v48 = vpop.f32.mrf.mxu1 }
 0x1e9   :  { %v658_v19 = vadd.f32 %v657_v48, %v1887_v22  ;;  %993 = vmatprep.mubr.f32.mxu0 %v785_v45  ;;  %v786_v52 = vmax.f32 %v656_v47, 0.0 }
 0x1ea   :  { %v661_v49 = vpop.f32.mrf.mxu1  ;;  %994 = vmatmul.mubr.f32.gmra.mxu0 %v784_v46 }
 0x1eb   :  { %v787_v50 = vmax.f32 %v658_v19, 0.0  ;;  %v662_v53 = vadd.f32 %v661_v49, %v1883_v9 }
 0x1ec   :  { %v663_v41 = vpop.f32.mrf.mxu1 }
 0x1ed   :  { %v664_v55 = vadd.f32 %v663_v41, %v1887_v22  ;;  %998 = vmatprep.mubr.f32.mxu0 %v787_v50  ;;  %v788_v58 = vmax.f32 %v662_v53, 0.0 }
 0x1ee   :  { %v667_v56 = vpop.f32.mrf.mxu1  ;;  %999 = vmatmul.mubr.f32.gmra.mxu0 %v786_v52 }
 0x1ef   :  { %v789_v57 = vmax.f32 %v664_v55, 0.0  ;;  %v668_v14 = vadd.f32 %v667_v56, %v1883_v9 }
 0x1f0   :  { %v669_v59 = vpop.f32.mrf.mxu1 }
 0x1f1   :  { %v670_v61 = vadd.f32 %v669_v59, %v1887_v22  ;;  %1003 = vmatprep.mubr.f32.mxu0 %v789_v57  ;;  %v790_v1 = vmax.f32 %v668_v14, 0.0 }
 0x1f2   :  { %v673_v62 = vpop.f32.mrf.mxu1  ;;  %1004 = vmatmul.mubr.f32.gmra.mxu0 %v788_v58 }
 0x1f3   :  { %v791_v63 = vmax.f32 %v670_v61, 0.0  ;;  %v674_v2 = vadd.f32 %v673_v62, %v1883_v9 }
 0x1f4   :  { %v675_v24 = vpop.f32.mrf.mxu1 }
 0x1f5   :  { %v676_v11 = vadd.f32 %v675_v24, %v1887_v22  ;;  %1008 = vmatprep.mubr.f32.mxu0 %v791_v63  ;;  %v792_v42 = vmax.f32 %v674_v2, 0.0 }
 0x1f6   :  { %v679_v6 = vpop.f32.mrf.mxu1  ;;  %1009 = vmatmul.mubr.f32.gmra.mxu0 %v790_v1 }
 0x1f7   :  { %v793_v10 = vmax.f32 %v676_v11, 0.0  ;;  %v680_v13 = vadd.f32 %v679_v6, %v1883_v9 }
 0x1f8   :  { %v681_v17 = vpop.f32.mrf.mxu1 }
 0x1f9   :  { %v682_v60 = vadd.f32 %v681_v17, %v1887_v22  ;;  %1013 = vmatprep.mubr.f32.mxu0 %v793_v10  ;;  %v794_v16 = vmax.f32 %v680_v13, 0.0 }
 0x1fa   :  { %v685_v15 = vpop.f32.mrf.mxu1  ;;  %1014 = vmatmul.mubr.f32.gmra.mxu0 %v792_v42 }
 0x1fb   :  { %v795_v33 = vmax.f32 %v682_v60, 0.0  ;;  %v686_v18 = vadd.f32 %v685_v15, %v1883_v9 }
 0x1fc   :  { %v687_v20 = vpop.f32.mrf.mxu1 }
 0x1fd   :  { %v688_v21 = vadd.f32 %v687_v20, %v1887_v22  ;;  %1018 = vmatprep.mubr.f32.mxu0 %v795_v33  ;;  %v796_v8 = vmax.f32 %v686_v18, 0.0 }
 0x1fe   :  { %v691_v25 = vpop.f32.mrf.mxu1  ;;  %1019 = vmatmul.mubr.f32.gmra.mxu0 %v794_v16 }
 0x1ff   :  { %v797_v23 = vmax.f32 %v688_v21, 0.0  ;;  %v692_v26 = vadd.f32 %v691_v25, %v1883_v9 }
 0x200   :  { %v693_v27 = vpop.f32.mrf.mxu1 }
 0x201   :  { %v694_v51 = vadd.f32 %v693_v27, %v1887_v22  ;;  %1023 = vmatprep.mubr.f32.mxu0 %v797_v23  ;;  %v798_v29 = vmax.f32 %v692_v26, 0.0 }
 0x202   :  { %v697_v3 = vpop.f32.mrf.mxu1  ;;  %1024 = vmatmul.mubr.f32.gmra.mxu0 %v796_v8 }
 0x203   :  { %v799_v28 = vmax.f32 %v694_v51, 0.0  ;;  %v698_v31 = vadd.f32 %v697_v3, %v1883_v9  ;;  %v1956_v3 = vld [vmem:[%s2092_s6] ss:$0 sm:$0xff] }
 0x204   :  { %v699_v5 = vpop.f32.mrf.mxu1 }
 0x205   :  { %v700_v4 = vadd.f32 %v699_v5, %v1887_v22  ;;  %1028 = vmatprep.mubr.f32.mxu0 %v799_v28  ;;  %v800_v44 = vmax.f32 %v698_v31, 0.0 }
 0x206   :  { %v703_v7 = vpop.f32.mrf.mxu1  ;;  %1029 = vmatmul.mubr.f32.gmra.mxu0 %v798_v29 }
 0x207   :  { %v801_v32 = vmax.f32 %v700_v4, 0.0  ;;  %v704_v35 = vadd.f32 %v703_v7, %v1883_v9 }
 0x208   :  { %v705_v12 = vpop.f32.mrf.mxu1 }
 0x209   :  { %v706_v36 = vadd.f32 %v705_v12, %v1887_v22  ;;  %1033 = vmatprep.mubr.f32.mxu0 %v801_v32  ;;  %v802_v38 = vmax.f32 %v704_v35, 0.0 }
 0x20a   :  { %v709_v37 = vpop.f32.mrf.mxu1  ;;  %1034 = vmatmul.mubr.f32.gmra.mxu0 %v800_v44 }
 0x20b   :  { %v803_v0 = vmax.f32 %v706_v36, 0.0  ;;  %v710_v34 = vadd.f32 %v709_v37, %v1883_v9 }
 0x20c   :  { %v711_v39 = vpop.f32.mrf.mxu1 }
 0x20d   :  { %v712_v40 = vadd.f32 %v711_v39, %v1887_v22  ;;  %1038 = vmatprep.mubr.f32.mxu0 %v803_v0  ;;  %v804_v54 = vmax.f32 %v710_v34, 0.0 }
 0x20e   :  { %v715_v30 = vpop.f32.mrf.mxu1  ;;  %1039 = vmatmul.mubr.f32.gmra.mxu0 %v802_v38 }
 0x20f   :  { %v805_v43 = vmax.f32 %v712_v40, 0.0  ;;  %v716_v45 = vadd.f32 %v715_v30, %v1883_v9 }
 0x210   :  { %v717_v46 = vpop.f32.mrf.mxu1 }
 0x211   :  { %v718_v47 = vadd.f32 %v717_v46, %v1887_v22  ;;  %1043 = vmatprep.mubr.f32.mxu0 %v805_v43  ;;  %v806_v49 = vmax.f32 %v716_v45, 0.0 }
 0x212   :  { %v721_v48 = vpop.f32.mrf.mxu1  ;;  %1044 = vmatmul.mubr.f32.gmra.mxu0 %v804_v54 }
 0x213   :  { %v807_v19 = vmax.f32 %v718_v47, 0.0  ;;  %v722_v50 = vadd.f32 %v721_v48, %v1883_v9 }
 0x214   :  { %v723_v52 = vpop.f32.mrf.mxu1 }
 0x215   :  { %v724_v53 = vadd.f32 %v723_v52, %v1887_v22  ;;  %1048 = vmatprep.mubr.f32.mxu0 %v807_v19  ;;  %v808_v56 = vmax.f32 %v722_v50, 0.0 }
 0x216   :  { %v727_v41 = vpop.f32.mrf.mxu1  ;;  %1049 = vmatmul.mubr.f32.gmra.mxu0 %v806_v49 }
 0x217   :  { %v809_v55 = vmax.f32 %v724_v53, 0.0  ;;  %v728_v57 = vadd.f32 %v727_v41, %v1883_v9 }
 0x218   :  { %v729_v58 = vpop.f32.mrf.mxu1 }
 0x219   :  { %v730_v14 = vadd.f32 %v729_v58, %v1887_v22  ;;  %1053 = vmatprep.mubr.f32.mxu0 %v809_v55  ;;  %v810_v62 = vmax.f32 %v728_v57, 0.0 }
 0x21a   :  { %v733_v59 = vpop.f32.mrf.mxu1  ;;  %1054 = vmatmul.mubr.f32.gmra.mxu0 %v808_v56 }
 0x21b   :  { %v811_v61 = vmax.f32 %v730_v14, 0.0  ;;  %v734_v63 = vadd.f32 %v733_v59, %v1883_v9 }
 0x21c   :  { %v735_v1 = vpop.f32.mrf.mxu1 }
 0x21d   :  { %v736_v2 = vadd.f32 %v735_v1, %v1887_v22  ;;  %1058 = vmatprep.mubr.f32.mxu0 %v811_v61  ;;  %v812_v6 = vmax.f32 %v734_v63, 0.0 }
 0x21e   :  { %v739_v24 = vpop.f32.mrf.mxu1  ;;  %1059 = vmatmul.mubr.f32.gmra.mxu0 %v810_v62 }
 0x21f   :  { %v813_v11 = vmax.f32 %v736_v2, 0.0  ;;  %v740_v10 = vadd.f32 %v739_v24, %v1883_v9 }
 0x220   :  { %v741_v42 = vpop.f32.mrf.mxu1 }
 0x221   :  { %v742_v13 = vadd.f32 %v741_v42, %v1887_v22  ;;  %1063 = vmatprep.mubr.f32.mxu0 %v813_v11  ;;  %v814_v15 = vmax.f32 %v740_v10, 0.0 }
 0x222   :  { %v745_v17 = vpop.f32.mrf.mxu1  ;;  %1064 = vmatmul.mubr.f32.gmra.mxu0 %v812_v6 }
 0x223   :  { %v815_v60 = vmax.f32 %v742_v13, 0.0  ;;  %v746_v33 = vadd.f32 %v745_v17, %v1883_v9 }
 0x224   :  { %v747_v16 = vpop.f32.mrf.mxu1 }
 0x225   :  { %v748_v18 = vadd.f32 %v747_v16, %v1887_v22  ;;  %1068 = vmatprep.mubr.f32.mxu0 %v815_v60  ;;  %v816_v25 = vmax.f32 %v746_v33, 0.0 }
 0x226   :  { %v751_v20 = vpop.f32.mrf.mxu1  ;;  %1069 = vmatmul.mubr.f32.gmra.mxu0 %v814_v15 }
 0x227   :  { %v817_v21 = vmax.f32 %v748_v18, 0.0  ;;  %v752_v23 = vadd.f32 %v751_v20, %v1883_v9 }
 0x228   :  { %v753_v8 = vpop.f32.mrf.mxu1 }
 0x229   :  { %v754_v26 = vadd.f32 %v753_v8, %v1887_v22  ;;  %1073 = vmatprep.mubr.f32.mxu0 %v817_v21  ;;  %v818_v51 = vmax.f32 %v752_v23, 0.0 }
 0x22a   :  { %1074 = vmatmul.mubr.f32.gmra.mxu0 %v816_v25 }
 0x22b   :  { %v819_v27 = vmax.f32 %v754_v26, 0.0 }
 0x22d   :  { %1078 = vmatprep.mubr.f32.mxu0 %v819_v27 }
 0x22e   :  { %1079 = vmatmul.mubr.f32.gmra.mxu0 %v818_v51 }
 0x272   :  { %v925_v28 = vpop.f32.mrf.mxu0 }
 0x273   :  { %v926_v29 = vadd.f32 %v1956_v3, %v925_v28 }
 0x274   :  { %v927_v31 = vpop.f32.mrf.mxu0 }
 0x275   :  { %1084 = vst [vmem:[%s2093_s7] sm:$0xff] %v926_v29 }
 0x276   :  { %v930_v9 = vpop.f32.mrf.mxu0 }
 0x277   :  { %v931_v22 = vadd.f32 %v1956_v3, %v930_v9 }
 0x278   :  { %v932_v5 = vpop.f32.mrf.mxu0 }
 0x279   :  { %1085 = vst [vmem:[%s2093_s7 + $0x8] sm:$0xff] %v931_v22 }
 0x27a   :  { %v935_v4 = vpop.f32.mrf.mxu0 }
 0x27b   :  { %v936_v7 = vadd.f32 %v1956_v3, %v935_v4 }
 0x27c   :  { %v937_v32 = vpop.f32.mrf.mxu0 }
 0x27d   :  { %1086 = vst [vmem:[%s2093_s7 + $0x10] sm:$0xff] %v936_v7 }
 0x27e   :  { %v940_v44 = vpop.f32.mrf.mxu0 }
 0x27f   :  { %v941_v35 = vadd.f32 %v1956_v3, %v940_v44 }
 0x280   :  { %v942_v12 = vpop.f32.mrf.mxu0 }
 0x281   :  { %1087 = vst [vmem:[%s2093_s7 + $0x18] sm:$0xff] %v941_v35 }
 0x282   :  { %v945_v36 = vpop.f32.mrf.mxu0 }
 0x283   :  { %v946_v37 = vadd.f32 %v1956_v3, %v945_v36 }
 0x284   :  { %v947_v0 = vpop.f32.mrf.mxu0 }
 0x285   :  { %1088 = vst [vmem:[%s2093_s7 + $0x20] sm:$0xff] %v946_v37 }
 0x286   :  { %v950_v38 = vpop.f32.mrf.mxu0 }
 0x287   :  { %v951_v34 = vadd.f32 %v1956_v3, %v950_v38 }
 0x288   :  { %v952_v39 = vpop.f32.mrf.mxu0 }
 0x289   :  { %1089 = vst [vmem:[%s2093_s7 + $0x28] sm:$0xff] %v951_v34 }
 0x28a   :  { %v955_v40 = vpop.f32.mrf.mxu0 }
 0x28b   :  { %v956_v30 = vadd.f32 %v1956_v3, %v955_v40 }
 0x28c   :  { %v957_v43 = vpop.f32.mrf.mxu0 }
 0x28d   :  { %1090 = vst [vmem:[%s2093_s7 + $0x30] sm:$0xff] %v956_v30 }
 0x28e   :  { %v960_v54 = vpop.f32.mrf.mxu0 }
 0x28f   :  { %v961_v45 = vadd.f32 %v1956_v3, %v960_v54 }
 0x290   :  { %v962_v46 = vpop.f32.mrf.mxu0 }
 0x291   :  { %1091 = vst [vmem:[%s2093_s7 + $0x38] sm:$0xff] %v961_v45 }
 0x292   :  { %v965_v47 = vpop.f32.mrf.mxu0 }
 0x293   :  { %v966_v48 = vadd.f32 %v1956_v3, %v965_v47 }
 0x294   :  { %v967_v19 = vpop.f32.mrf.mxu0 }
 0x295   :  { %1092 = vst [vmem:[%s2093_s7 + $0x40] sm:$0xff] %v966_v48 }
 0x296   :  { %v970_v49 = vpop.f32.mrf.mxu0 }
 0x297   :  { %v971_v50 = vadd.f32 %v1956_v3, %v970_v49 }
 0x298   :  { %v972_v52 = vpop.f32.mrf.mxu0 }
 0x299   :  { %1093 = vst [vmem:[%s2093_s7 + $0x48] sm:$0xff] %v971_v50 }
 0x29a   :  { %v975_v53 = vpop.f32.mrf.mxu0 }
 0x29b   :  { %v976_v41 = vadd.f32 %v1956_v3, %v975_v53 }
 0x29c   :  { %v977_v55 = vpop.f32.mrf.mxu0 }
 0x29d   :  { %1094 = vst [vmem:[%s2093_s7 + $0x50] sm:$0xff] %v976_v41 }
 0x29e   :  { %v980_v56 = vpop.f32.mrf.mxu0 }
 0x29f   :  { %v981_v57 = vadd.f32 %v1956_v3, %v980_v56 }
 0x2a0   :  { %v982_v58 = vpop.f32.mrf.mxu0 }
 0x2a1   :  { %1095 = vst [vmem:[%s2093_s7 + $0x58] sm:$0xff] %v981_v57 }
 0x2a2   :  { %v985_v14 = vpop.f32.mrf.mxu0 }
 0x2a3   :  { %v986_v59 = vadd.f32 %v1956_v3, %v985_v14 }
 0x2a4   :  { %v987_v61 = vpop.f32.mrf.mxu0 }
 0x2a5   :  { %1096 = vst [vmem:[%s2093_s7 + $0x60] sm:$0xff] %v986_v59 }
 0x2a6   :  { %v990_v62 = vpop.f32.mrf.mxu0 }
 0x2a7   :  { %v991_v63 = vadd.f32 %v1956_v3, %v990_v62 }
 0x2a8   :  { %v992_v1 = vpop.f32.mrf.mxu0 }
 0x2a9   :  { %1097 = vst [vmem:[%s2093_s7 + $0x68] sm:$0xff] %v991_v63 }
 0x2aa   :  { %v995_v2 = vpop.f32.mrf.mxu0 }
 0x2ab   :  { %v996_v24 = vadd.f32 %v1956_v3, %v995_v2 }
 0x2ac   :  { %v997_v11 = vpop.f32.mrf.mxu0 }
 0x2ad   :  { %1098 = vst [vmem:[%s2093_s7 + $0x70] sm:$0xff] %v996_v24 }
 0x2ae   :  { %v1000_v6 = vpop.f32.mrf.mxu0 }
 0x2af   :  { %v1001_v10 = vadd.f32 %v1956_v3, %v1000_v6 }
 0x2b0   :  { %v1002_v42 = vpop.f32.mrf.mxu0 }
 0x2b1   :  { %1099 = vst [vmem:[%s2093_s7 + $0x78] sm:$0xff] %v1001_v10 }
 0x2b2   :  { %v1005_v13 = vpop.f32.mrf.mxu0 }
 0x2b3   :  { %v1006_v17 = vadd.f32 %v1956_v3, %v1005_v13 }
 0x2b4   :  { %v1007_v60 = vpop.f32.mrf.mxu0 }
 0x2b5   :  { %1100 = vst [vmem:[%s2093_s7 + $0x80] sm:$0xff] %v1006_v17 }
 0x2b6   :  { %v1010_v15 = vpop.f32.mrf.mxu0 }
 0x2b7   :  { %v1011_v33 = vadd.f32 %v1956_v3, %v1010_v15 }
 0x2b8   :  { %v1012_v16 = vpop.f32.mrf.mxu0 }
 0x2b9   :  { %1101 = vst [vmem:[%s2093_s7 + $0x88] sm:$0xff] %v1011_v33 }
 0x2ba   :  { %v1015_v18 = vpop.f32.mrf.mxu0 }
 0x2bb   :  { %v1016_v20 = vadd.f32 %v1956_v3, %v1015_v18 }
 0x2bc   :  { %v1017_v21 = vpop.f32.mrf.mxu0 }
 0x2bd   :  { %1102 = vst [vmem:[%s2093_s7 + $0x90] sm:$0xff] %v1016_v20 }
 0x2be   :  { %v1020_v25 = vpop.f32.mrf.mxu0 }
 0x2bf   :  { %v1021_v23 = vadd.f32 %v1956_v3, %v1020_v25 }
 0x2c0   :  { %v1022_v8 = vpop.f32.mrf.mxu0 }
 0x2c1   :  { %1103 = vst [vmem:[%s2093_s7 + $0x98] sm:$0xff] %v1021_v23 }
 0x2c2   :  { %v1025_v26 = vpop.f32.mrf.mxu0 }
 0x2c3   :  { %v1026_v27 = vadd.f32 %v1956_v3, %v1025_v26 }
 0x2c4   :  { %v1027_v51 = vpop.f32.mrf.mxu0 }
 0x2c5   :  { %1104 = vst [vmem:[%s2093_s7 + $0xa0] sm:$0xff] %v1026_v27 }
 0x2c6   :  { %v1030_v28 = vpop.f32.mrf.mxu0 }
 0x2c7   :  { %v1031_v29 = vadd.f32 %v1956_v3, %v1030_v28 }
 0x2c8   :  { %v1032_v31 = vpop.f32.mrf.mxu0 }
 0x2c9   :  { %1105 = vst [vmem:[%s2093_s7 + $0xa8] sm:$0xff] %v1031_v29 }
 0x2ca   :  { %v1035_v9 = vpop.f32.mrf.mxu0 }
 0x2cb   :  { %v1036_v22 = vadd.f32 %v1956_v3, %v1035_v9 }
 0x2cc   :  { %v1037_v5 = vpop.f32.mrf.mxu0 }
 0x2cd   :  { %1106 = vst [vmem:[%s2093_s7 + $0xb0] sm:$0xff] %v1036_v22 }
 0x2ce   :  { %v1040_v4 = vpop.f32.mrf.mxu0 }
 0x2cf   :  { %v1041_v7 = vadd.f32 %v1956_v3, %v1040_v4 }
 0x2d0   :  { %v1042_v32 = vpop.f32.mrf.mxu0 }
 0x2d1   :  { %1107 = vst [vmem:[%s2093_s7 + $0xb8] sm:$0xff] %v1041_v7 }
 0x2d2   :  { %v1045_v44 = vpop.f32.mrf.mxu0 }
 0x2d3   :  { %v1046_v35 = vadd.f32 %v1956_v3, %v1045_v44 }
 0x2d4   :  { %v1047_v12 = vpop.f32.mrf.mxu0 }
 0x2d5   :  { %1108 = vst [vmem:[%s2093_s7 + $0xc0] sm:$0xff] %v1046_v35 }
 0x2d6   :  { %v1050_v36 = vpop.f32.mrf.mxu0 }
 0x2d7   :  { %v1051_v37 = vadd.f32 %v1956_v3, %v1050_v36 }
 0x2d8   :  { %v1052_v0 = vpop.f32.mrf.mxu0 }
 0x2d9   :  { %1109 = vst [vmem:[%s2093_s7 + $0xc8] sm:$0xff] %v1051_v37 }
 0x2da   :  { %v1055_v38 = vpop.f32.mrf.mxu0 }
 0x2db   :  { %v1056_v34 = vadd.f32 %v1956_v3, %v1055_v38 }
 0x2dc   :  { %v1057_v39 = vpop.f32.mrf.mxu0 }
 0x2dd   :  { %1110 = vst [vmem:[%s2093_s7 + $0xd0] sm:$0xff] %v1056_v34 }
 0x2de   :  { %v1060_v40 = vpop.f32.mrf.mxu0 }
 0x2df   :  { %v1061_v30 = vadd.f32 %v1956_v3, %v1060_v40 }
 0x2e0   :  { %v1062_v43 = vpop.f32.mrf.mxu0 }
 0x2e1   :  { %1111 = vst [vmem:[%s2093_s7 + $0xd8] sm:$0xff] %v1061_v30 }
 0x2e2   :  { %v1065_v54 = vpop.f32.mrf.mxu0 }
 0x2e3   :  { %v1066_v45 = vadd.f32 %v1956_v3, %v1065_v54 }
 0x2e4   :  { %v1067_v46 = vpop.f32.mrf.mxu0 }
 0x2e5   :  { %1112 = vst [vmem:[%s2093_s7 + $0xe0] sm:$0xff] %v1066_v45 }
 0x2e6   :  { %v1070_v47 = vpop.f32.mrf.mxu0 }
 0x2e7   :  { %v1071_v48 = vadd.f32 %v1956_v3, %v1070_v47 }
 0x2e8   :  { %v1072_v19 = vpop.f32.mrf.mxu0 }
 0x2e9   :  { %1113 = vst [vmem:[%s2093_s7 + $0xe8] sm:$0xff] %v1071_v48 }
 0x2ea   :  { %v1075_v49 = vpop.f32.mrf.mxu0 }
 0x2eb   :  { %v1076_v50 = vadd.f32 %v1956_v3, %v1075_v49 }
 0x2ec   :  { %v1077_v52 = vpop.f32.mrf.mxu0 }
 0x2ed   :  { %1114 = vst [vmem:[%s2093_s7 + $0xf0] sm:$0xff] %v1076_v50 }
 0x2ee   :  { %v1080_v53 = vpop.f32.mrf.mxu0 }
 0x2ef   :  { %v1081_v41 = vadd.f32 %v1956_v3, %v1080_v53 }
 0x2f0   :  { %v1082_v55 = vpop.f32.mrf.mxu0 }
 0x2f1   :  { %1115 = vst [vmem:[%s2093_s7 + $0xf8] sm:$0xff] %v1081_v41 }

</bundles_post_ra>
